<compile_context>
chip_gen: v6e
topology: v6e:2x2x1
jax: 0.10.0
libtpu: 0.0.40
codegen_flags: <defaults>
</compile_context>

<pallas_src>
from functools import partial

import jax
import jax.numpy as jnp
import numpy as np
from jax import lax
from jax.experimental import pallas as pl
from jax.experimental.pallas import tpu as pltpu

LN_EPS = 1e-5   # LayerNorm epsilon (OpenFold LayerNorm default)
EPS = 1e-3      # module asserts eps == 0.001
VMEM_LIMIT = 64 * 1024 * 1024   # explicit scoped-VMEM cap (re-derive per generation)


# --------------------------------------------------------------------------------------
# Kernel 1: LayerNorm + fused linear_1/linear_2 + mask      (one (batch, S-tile) / step)
# --------------------------------------------------------------------------------------
def _ln_ab_kernel(m_ref, mask_ref, lnw_ref, lnb_ref, w12_ref, b12_ref, a_ref, b_ref):
    _, tS, R, Cm = m_ref.shape
    H = w12_ref.shape[1] // 2

    # LayerNorm over c_m in f32 on the flat (tS*R, Cm) view.
    x = m_ref[0].astype(jnp.float32).reshape(tS * R, Cm)
    mu = jnp.mean(x, axis=-1, keepdims=True)
    xc = x - mu
    var = jnp.mean(xc * xc, axis=-1, keepdims=True)
    xn = xc * lax.rsqrt(var + LN_EPS) * lnw_ref[...] + lnb_ref[...]

    # linear_1 and linear_2 fused into a single bf16 MXU matmul (f32 accumulation).
    ab = jnp.dot(xn.astype(jnp.bfloat16), w12_ref[...],
                 preferred_element_type=jnp.float32) + b12_ref[...]      # (tS*R, 2H)

    # mask multiply after the bias (matches the module); mask arrives lane-dense.
    ab3 = ab.reshape(tS, R, 2 * H) * mask_ref[0][..., None]              # (tS, R, 2H)

    # Emit kernel-2-ready, lane-dense layouts.
    a3 = ab3[..., :H]                                                    # (tS, R, H)
    b3 = ab3[..., H:]                                                    # (tS, R, H)
    a_ref[0] = a3.reshape(tS, R * H).astype(a_ref.dtype)                 # [s, i*H+c]
    b_ref[0] = jnp.transpose(b3, (0, 2, 1)).reshape(tS, H * R).astype(b_ref.dtype)  # [s, e*R+j]


# --------------------------------------------------------------------------------------
# Kernel 2: outer-product mean hot path          (one (batch, residue-row tile) / step)
#   a_ref   : (1, S, tRi*H) bf16   residue-major, column i_loc*H + c
#   b_ref   : (1, S, H*R)   bf16   channel-major, column e*R + j
#   inv_ref : (1, tRi, R)   f32    1 / (mask^T mask + eps)   (precomputed)
#   z_ref   : (1, tRi, R, Cz)
#   wo_ref  : (Cz, H*H)     bf16   original w_o layout, column c*H + e
#   bo_ref  : (Cz, 1)       f32
#   o_ref   : (1, tRi, R, Cz)
#   o_sc    : VMEM (tRi*H, H*R) f32   N_seq-reduced outer product for this i-tile
# --------------------------------------------------------------------------------------
def _outer_kernel(a_ref, b_ref, inv_ref, z_ref, wo_ref, bo_ref, o_ref, o_sc, *, H):
    _, HH = wo_ref.shape
    R = b_ref.shape[2] // H
    tRi = a_ref.shape[2] // H

    # One MXU contraction over N_seq:  o_sc[(i,c), (e,j)] = sum_s a[s,(i,c)] b[s,(e,j)]
    o_sc[...] = lax.dot_general(a_ref[0], b_ref[0], (((0,), (0,)), ((), ())),
                                preferred_element_type=jnp.float32)

    wo = wo_ref[...]                      # (Cz, H*H)
    bo = bo_ref[...]                      # (Cz, 1)
    # tRi is small by construction (scratch budget); static unroll keeps slices static.
    for i in range(tRi):
        # Contiguous rows; (H, H*R) -> (H*H, R) is a pure row-major split: [(c*H+e), j].
        p_i = o_sc[i * H:(i + 1) * H, :].reshape(HH, R)
        # K = H*H projection, standard MXU orientation (weights as LHS), bf16 operands.
        ot = jnp.dot(wo, p_i.astype(jnp.bfloat16),
                     preferred_element_type=jnp.float32)                # (Cz, R) [z, j]
        ot = (ot + bo) * inv_ref[0, i:i + 1, :]                         # mask-mean norm
        res = z_ref[0, i].astype(jnp.float32) + ot.T                    # (R, Cz)
        o_ref[0, i] = res.astype(o_ref.dtype)


# --------------------------------------------------------------------------------------
# Tile pickers (overridable; must satisfy the (8,128) BlockSpec rules)
# --------------------------------------------------------------------------------------
def _pick_s_tile(S):
    for t in (64, 32, 16, 8):
        if t <= S and S % t == 0:
            return t
    return S


def _pick_ri_tile(R, H, budget_bytes=16 << 20):
    cands = []
    for t in range(1, R + 1):
        if R % t:
            continue
        if t == R or (t % 8 == 0 and (t * H) % 128 == 0):
            cands.append(t)
    good = [t for t in cands if (R // t) >= 2 and t * H * H * R * 4 <= budget_bytes]
    if good:
        return max(good)
    return min(cands)


# --------------------------------------------------------------------------------------
# Wrapper
# --------------------------------------------------------------------------------------
def outer_product_mean(m, mask, z, params, *, s_tile=None, ri_tile=None):
    B, S, R, Cm = m.shape
    H = params["w1"].shape[0]
    Cz = params["w_o"].shape[0]
    assert params["w_o"].shape[1] == H * H

    if s_tile is None:
        s_tile = _pick_s_tile(S)
    if ri_tile is None:
        ri_tile = _pick_ri_tile(R, H)
    assert S % s_tile == 0 and (s_tile == S or s_tile % 8 == 0)
    assert R % ri_tile == 0
    assert ri_tile == R or (ri_tile % 8 == 0 and (ri_tile * H) % 128 == 0)

    f32, bf16 = jnp.float32, jnp.bfloat16
    lnw = params["ln_w"].reshape(1, Cm).astype(f32)
    lnb = params["ln_b"].reshape(1, Cm).astype(f32)
    w12 = jnp.concatenate([params["w1"].T, params["w2"].T], axis=1).astype(bf16)  # (Cm, 2H)
    b12 = jnp.concatenate([params["b1"], params["b2"]]).reshape(1, 2 * H).astype(f32)
    mask_f = mask.astype(f32)

    a, b_cm = pl.pallas_call(
        _ln_ab_kernel,
        grid=(B, S // s_tile),
        in_specs=[
            pl.BlockSpec((1, s_tile, R, Cm), lambda b, s: (b, s, 0, 0)),
            pl.BlockSpec((1, s_tile, R), lambda b, s: (b, s, 0)),       # lane-dense mask
            pl.BlockSpec((1, Cm), lambda b, s: (0, 0)),
            pl.BlockSpec((1, Cm), lambda b, s: (0, 0)),
            pl.BlockSpec((Cm, 2 * H), lambda b, s: (0, 0)),
            pl.BlockSpec((1, 2 * H), lambda b, s: (0, 0)),
        ],
        out_specs=[
            pl.BlockSpec((1, s_tile, R * H), lambda b, s: (b, s, 0)),
            pl.BlockSpec((1, s_tile, H * R), lambda b, s: (b, s, 0)),
        ],
        out_shape=[
            jax.ShapeDtypeStruct((B, S, R * H), bf16),
            jax.ShapeDtypeStruct((B, S, H * R), bf16),
        ],
        compiler_params=pltpu.CompilerParams(
            dimension_semantics=("parallel", "parallel"),
            vmem_limit_bytes=VMEM_LIMIT),
    )(m, mask_f, lnw, lnb, w12, b12)

    # norm[i,j] = sum_s mask[s,i]*mask[s,j]; precompute its reciprocal once per batch
    # so tiled kernel 2 never recomputes / re-accumulates it.
    inv_norm = 1.0 / (jnp.einsum("bsi,bsj->bij", mask_f, mask_f) + EPS)   # (B, R, R)
    wo = params["w_o"].astype(bf16)                                       # (Cz, H*H)
    bo = params["b_o"].reshape(Cz, 1).astype(f32)

    out = pl.pallas_call(
        partial(_outer_kernel, H=H),
        grid=(B, R // ri_tile),
        in_specs=[
            pl.BlockSpec((1, S, ri_tile * H), lambda b, i: (b, 0, i)),   # i-tiled columns
            pl.BlockSpec((1, S, H * R), lambda b, i: (b, 0, 0)),
            pl.BlockSpec((1, ri_tile, R), lambda b, i: (b, i, 0)),
            pl.BlockSpec((1, ri_tile, R, Cz), lambda b, i: (b, i, 0, 0)),
            pl.BlockSpec((Cz, H * H), lambda b, i: (0, 0)),
            pl.BlockSpec((Cz, 1), lambda b, i: (0, 0)),
        ],
        out_specs=pl.BlockSpec((1, ri_tile, R, Cz), lambda b, i: (b, i, 0, 0)),
        out_shape=jax.ShapeDtypeStruct((B, R, R, Cz), z.dtype),
        scratch_shapes=[pltpu.VMEM((ri_tile * H, H * R), jnp.float32)],
        compiler_params=pltpu.CompilerParams(
            dimension_semantics=("parallel", "parallel"),
            vmem_limit_bytes=VMEM_LIMIT),
    )(a, b_cm, inv_norm, z, wo, bo)

    return out


# --------------------------------------------------------------------------------------
# Pure-JAX reference (mirrors the PyTorch forward semantics exactly)
# --------------------------------------------------------------------------------------
def _reference(m, mask, z, p):
    B, S, R, Cm = m.shape
    H = p["w1"].shape[0]
    mu = m.mean(-1, keepdims=True)
    var = ((m - mu) ** 2).mean(-1, keepdims=True)
    mn = (m - mu) / jnp.sqrt(var + LN_EPS) * p["ln_w"] + p["ln_b"]
    msk = mask[..., None]
    a = (mn @ p["w1"].T + p["b1"]) * msk
    b = (mn @ p["w2"].T + p["b2"]) * msk
    a = jnp.swapaxes(a, 1, 2)           # (B, R, S, H)
    bb = jnp.swapaxes(b, 1, 2)
    outer = jnp.einsum('bisc,bjse->bijce', a, bb)
    outer = outer.reshape(B, R, R, H * H)
    outer = outer @ p["w_o"].T + p["b_o"]
    norm = jnp.einsum('bsi,bsj->bij', mask, mask)[..., None]
    return z + outer / (norm + EPS)


if __name__ == "__main__":
    B, S, R = 2, 16, 16          # batch, N_seq, N_res
    Cm, H, Cz = 32, 16, 16       # c_m, c_hidden, c_z

    key = jax.random.PRNGKey(0)
    ks = jax.random.split(key, 10)
    m = jax.random.normal(ks[0], (B, S, R, Cm), jnp.float32)
    mask = (jax.random.uniform(ks[1], (B, S, R)) > 0.2).astype(jnp.float32)
    z = 0.1 * jax.random.normal(ks[2], (B, R, R, Cz), jnp.float32)

    # Deterministic synthetic parameters (module __init__ shapes).  linear_out has
    # init='final' (zeros) in the real model; small random values keep the test
    # non-trivial.
    params = {
        "ln_w": 1.0 + 0.1 * jax.random.normal(ks[3], (Cm,), jnp.float32),
        "ln_b": 0.1 * jax.random.normal(ks[4], (Cm,), jnp.float32),
        "w1": 0.2 * jax.random.normal(ks[5], (H, Cm), jnp.float32),
        "b1": 0.1 * jax.random.normal(ks[6], (H,), jnp.float32),
        "w2": 0.2 * jax.random.normal(ks[7], (H, Cm), jnp.float32),
        "b2": 0.1 * jax.random.normal(ks[8], (H,), jnp.float32),
        "w_o": 0.05 * jax.random.normal(ks[9], (Cz, H * H), jnp.float32),
        "b_o": 0.01 * jnp.arange(Cz, dtype=jnp.float32),
    }

    # s_tile=8 / ri_tile=8 exercise the multi-tile (S-tiled, residue-row-tiled) paths.
    out = jax.block_until_ready(
        outer_product_mean(m, mask, z, params, s_tile=8, ri_tile=8))
    ref = jax.block_until_ready(_reference(m, mask, z, params))
    assert out.shape == (B, R, R, Cz)
    # a/b and the matmul operands are bf16 (f32 accumulation), so tolerances are
    # slightly looser than pure-f32.
    np.testing.assert_allclose(np.asarray(out), np.asarray(ref), rtol=2e-2, atol=2e-2)
    print("KERNEL_OK")
</pallas_src>

<mosaic_0001>
module attributes {stable_mosaic.version = 11 : i64} {
  func.func @_ln_ab_kernel(%arg0: i32, %arg1: i32, %arg2: memref<1x8x16x32xf32, #tpu.memory_space<vmem>>, %arg3: memref<1x8x16xf32, #tpu.memory_space<vmem>>, %arg4: memref<1x32xf32, #tpu.memory_space<vmem>>, %arg5: memref<1x32xf32, #tpu.memory_space<vmem>>, %arg6: memref<32x32xbf16, #tpu.memory_space<vmem>>, %arg7: memref<1x32xf32, #tpu.memory_space<vmem>>, %arg8: memref<1x8x256xbf16, #tpu.memory_space<vmem>>, %arg9: memref<1x8x256xbf16, #tpu.memory_space<vmem>>) attributes {dimension_semantics = [#tpu.dimension_semantics<parallel>, #tpu.dimension_semantics<parallel>], iteration_bounds = array<i64: 2, 2>, scalar_prefetch = 0 : i64, scratch_operands = 0 : i64, tpu.core_type = #tpu.core_type<tc>, window_params = [{transform_indices = @transform_0, window_bounds = array<i64: 1, 8, 16, 32>}, {transform_indices = @transform_1, window_bounds = array<i64: 1, 8, 16>}, {pipeline_mode = #tpu.pipeline_mode<synchronous>, transform_indices = @transform_2, window_bounds = array<i64: 1, 32>}, {pipeline_mode = #tpu.pipeline_mode<synchronous>, transform_indices = @transform_3, window_bounds = array<i64: 1, 32>}, {pipeline_mode = #tpu.pipeline_mode<synchronous>, transform_indices = @transform_4, window_bounds = array<i64: 32, 32>}, {pipeline_mode = #tpu.pipeline_mode<synchronous>, transform_indices = @transform_5, window_bounds = array<i64: 1, 32>}, {transform_indices = @transform_6, window_bounds = array<i64: 1, 8, 256>}, {transform_indices = @transform_7, window_bounds = array<i64: 1, 8, 256>}]} {
    %c0 = arith.constant 0 : index
    %c0_0 = arith.constant 0 : index
    %c0_1 = arith.constant 0 : index
    %c0_2 = arith.constant 0 : index
    %0 = vector.load %arg2[%c0, %c0_0, %c0_1, %c0_2] : memref<1x8x16x32xf32, #tpu.memory_space<vmem>>, vector<1x8x16x32xf32>
    %1 = vector.shape_cast %0 : vector<1x8x16x32xf32> to vector<8x16x32xf32>
    %2 = vector.shape_cast %1 : vector<8x16x32xf32> to vector<128x32xf32>
    %cst = arith.constant dense<0.000000e+00> : vector<128xf32>
    %3 = vector.multi_reduction <add>, %2, %cst [1] : vector<128x32xf32> to vector<128xf32>
    %4 = vector.shape_cast %3 : vector<128xf32> to vector<128x1xf32>
    %cst_3 = arith.constant 3.200000e+01 : f32
    %5 = vector.broadcast %cst_3 : f32 to vector<128x1xf32>
    %6 = arith.divf %4, %5 : vector<128x1xf32>
    %7 = vector.broadcast %6 : vector<128x1xf32> to vector<128x32xf32>
    %8 = arith.subf %2, %7 : vector<128x32xf32>
    %9 = arith.mulf %8, %8 : vector<128x32xf32>
    %cst_4 = arith.constant dense<0.000000e+00> : vector<128xf32>
    %10 = vector.multi_reduction <add>, %9, %cst_4 [1] : vector<128x32xf32> to vector<128xf32>
    %11 = vector.shape_cast %10 : vector<128xf32> to vector<128x1xf32>
    %cst_5 = arith.constant 3.200000e+01 : f32
    %12 = vector.broadcast %cst_5 : f32 to vector<128x1xf32>
    %13 = arith.divf %11, %12 : vector<128x1xf32>
    %cst_6 = arith.constant 9.99999974E-6 : f32
    %14 = vector.broadcast %cst_6 : f32 to vector<128x1xf32>
    %15 = arith.addf %13, %14 : vector<128x1xf32>
    %16 = math.rsqrt %15 : vector<128x1xf32>
    %17 = vector.broadcast %16 : vector<128x1xf32> to vector<128x32xf32>
    %18 = arith.mulf %8, %17 : vector<128x32xf32>
    %c0_7 = arith.constant 0 : index
    %c0_8 = arith.constant 0 : index
    %19 = vector.load %arg4[%c0_7, %c0_8] : memref<1x32xf32, #tpu.memory_space<vmem>>, vector<1x32xf32>
    %20 = vector.broadcast %19 : vector<1x32xf32> to vector<128x32xf32>
    %21 = arith.mulf %18, %20 : vector<128x32xf32>
    %c0_9 = arith.constant 0 : index
    %c0_10 = arith.constant 0 : index
    %22 = vector.load %arg5[%c0_9, %c0_10] : memref<1x32xf32, #tpu.memory_space<vmem>>, vector<1x32xf32>
    %23 = vector.broadcast %22 : vector<1x32xf32> to vector<128x32xf32>
    %24 = arith.addf %21, %23 : vector<128x32xf32>
    %25 = arith.truncf %24 : vector<128x32xf32> to vector<128x32xbf16>
    %c0_11 = arith.constant 0 : index
    %c0_12 = arith.constant 0 : index
    %26 = vector.load %arg6[%c0_11, %c0_12] : memref<32x32xbf16, #tpu.memory_space<vmem>>, vector<32x32xbf16>
    %cst_13 = arith.constant dense<0.000000e+00> : vector<128x32xf32>
    %27 = tpu.matmul %25, %26, %cst_13 {dimension_numbers = #tpu.dot_dimension_numbers<[1], [0], [0], [1], [0, 0, 1, 1], [], []>} : vector<128x32xbf16>, vector<32x32xbf16>, vector<128x32xf32> -> vector<128x32xf32>
    %c0_14 = arith.constant 0 : index
    %c0_15 = arith.constant 0 : index
    %28 = vector.load %arg7[%c0_14, %c0_15] : memref<1x32xf32, #tpu.memory_space<vmem>>, vector<1x32xf32>
    %29 = vector.broadcast %28 : vector<1x32xf32> to vector<128x32xf32>
    %30 = arith.addf %27, %29 : vector<128x32xf32>
    %31 = vector.shape_cast %30 : vector<128x32xf32> to vector<8x16x32xf32>
    %c0_16 = arith.constant 0 : index
    %c0_17 = arith.constant 0 : index
    %c0_18 = arith.constant 0 : index
    %32 = vector.load %arg3[%c0_16, %c0_17, %c0_18] : memref<1x8x16xf32, #tpu.memory_space<vmem>>, vector<1x8x16xf32>
    %33 = vector.shape_cast %32 : vector<1x8x16xf32> to vector<8x16xf32>
    %34 = vector.shape_cast %33 : vector<8x16xf32> to vector<8x16x1xf32>
    %35 = vector.broadcast %34 : vector<8x16x1xf32> to vector<8x16x32xf32>
    %36 = arith.mulf %31, %35 : vector<8x16x32xf32>
    %37 = vector.extract_strided_slice %36 {offsets = [0, 0, 0], sizes = [8, 16, 16], strides = [1, 1, 1]} : vector<8x16x32xf32> to vector<8x16x16xf32>
    %38 = vector.extract_strided_slice %36 {offsets = [0, 0, 16], sizes = [8, 16, 16], strides = [1, 1, 1]} : vector<8x16x32xf32> to vector<8x16x16xf32>
    %39 = vector.shape_cast %37 : vector<8x16x16xf32> to vector<8x256xf32>
    %40 = arith.truncf %39 : vector<8x256xf32> to vector<8x256xbf16>
    %c0_19 = arith.constant 0 : index
    %c0_20 = arith.constant 0 : index
    %c0_21 = arith.constant 0 : index
    %41 = vector.load %arg8[%c0_19, %c0_20, %c0_21] : memref<1x8x256xbf16, #tpu.memory_space<vmem>>, vector<1x8x256xbf16>
    %42 = vector.shape_cast %41 : vector<1x8x256xbf16> to vector<8x256xbf16>
    %43 = vector.shape_cast %40 : vector<8x256xbf16> to vector<1x8x256xbf16>
    tpu.vector_store %arg8[%c0_19, %c0_20, %c0_21], %43 {strides = array<i32>} : memref<1x8x256xbf16, #tpu.memory_space<vmem>>, vector<1x8x256xbf16>,
    %44 = tpu.transpose %38, [0, 2, 1] : vector<8x16x16xf32> -> vector<8x16x16xf32>
    %45 = vector.shape_cast %44 : vector<8x16x16xf32> to vector<8x256xf32>
    %46 = arith.truncf %45 : vector<8x256xf32> to vector<8x256xbf16>
    %c0_22 = arith.constant 0 : index
    %c0_23 = arith.constant 0 : index
    %c0_24 = arith.constant 0 : index
    %47 = vector.load %arg9[%c0_22, %c0_23, %c0_24] : memref<1x8x256xbf16, #tpu.memory_space<vmem>>, vector<1x8x256xbf16>
    %48 = vector.shape_cast %47 : vector<1x8x256xbf16> to vector<8x256xbf16>
    %49 = vector.shape_cast %46 : vector<8x256xbf16> to vector<1x8x256xbf16>
    tpu.vector_store %arg9[%c0_22, %c0_23, %c0_24], %49 {strides = array<i32>} : memref<1x8x256xbf16, #tpu.memory_space<vmem>>, vector<1x8x256xbf16>,
    return
  }
  func.func @transform_0(%arg0: i32, %arg1: i32) -> (i32, i32, i32, i32) {
    %c0_i32 = arith.constant 0 : i32
    %c0_i32_0 = arith.constant 0 : i32
    %c0_i32_1 = arith.constant 0 : i32
    return %arg0, %arg1, %c0_i32, %c0_i32_0 : i32, i32, i32, i32
  }
  func.func @transform_1(%arg0: i32, %arg1: i32) -> (i32, i32, i32) {
    %c0_i32 = arith.constant 0 : i32
    %c0_i32_0 = arith.constant 0 : i32
    return %arg0, %arg1, %c0_i32 : i32, i32, i32
  }
  func.func @transform_2(%arg0: i32, %arg1: i32) -> (i32, i32) {
    %c0_i32 = arith.constant 0 : i32
    %c0_i32_0 = arith.constant 0 : i32
    %c0_i32_1 = arith.constant 0 : i32
    return %c0_i32, %c0_i32_0 : i32, i32
  }
  func.func @transform_3(%arg0: i32, %arg1: i32) -> (i32, i32) {
    %c0_i32 = arith.constant 0 : i32
    %c0_i32_0 = arith.constant 0 : i32
    %c0_i32_1 = arith.constant 0 : i32
    return %c0_i32, %c0_i32_0 : i32, i32
  }
  func.func @transform_4(%arg0: i32, %arg1: i32) -> (i32, i32) {
    %c0_i32 = arith.constant 0 : i32
    %c0_i32_0 = arith.constant 0 : i32
    %c0_i32_1 = arith.constant 0 : i32
    return %c0_i32, %c0_i32_0 : i32, i32
  }
  func.func @transform_5(%arg0: i32, %arg1: i32) -> (i32, i32) {
    %c0_i32 = arith.constant 0 : i32
    %c0_i32_0 = arith.constant 0 : i32
    %c0_i32_1 = arith.constant 0 : i32
    return %c0_i32, %c0_i32_0 : i32, i32
  }
  func.func @transform_6(%arg0: i32, %arg1: i32) -> (i32, i32, i32) {
    %c0_i32 = arith.constant 0 : i32
    %c0_i32_0 = arith.constant 0 : i32
    return %arg0, %arg1, %c0_i32 : i32, i32, i32
  }
  func.func @transform_7(%arg0: i32, %arg1: i32) -> (i32, i32, i32) {
    %c0_i32 = arith.constant 0 : i32
    %c0_i32_0 = arith.constant 0 : i32
    return %arg0, %arg1, %c0_i32 : i32, i32, i32
  }
}

</mosaic_0001>

<bundles_post_ra>
// kernel: tpu_custom_call.1
= control target key start
LH: loop header
LB: loop body
LE: loop exit
PB: predicated region body
PF: predicated region fallthrough
CT: control target
= control target key end

     0   :  { %s3478_s0 = inlined_call_operand.hbm [shape: f32[2,16,16,32], index: 0, kind: input, shape index: {}]   ;;  %s3479_s1 = inlined_call_operand.hbm [shape: f32[2,16,16], index: 1, kind: input, shape index: {}]   ;;  %s3480_s2 = inlined_call_operand.vmem [shape: f32[1,32], index: 2, kind: input, shape index: {}]   ;;  %s3481_s3 = inlined_call_operand.vmem [shape: f32[1,32], index: 3, kind: input, shape index: {}]   ;;  %s3482_s4 = inlined_call_operand.hbm [shape: bf16[32,32], index: 4, kind: input, shape index: {}]   ;;  %s3483_s5 = inlined_call_operand.vmem [shape: f32[1,32], index: 5, kind: input, shape index: {}]   ;;  %s3484_s6 = inlined_call_operand.hbm [shape: bf16[2,16,256], index: 6, kind: output, shape index: {0}]   ;;  %s3485_s7 = inlined_call_operand.hbm [shape: bf16[2,16,256], index: 7, kind: output, shape index: {1}]  }
   0x1   :  { %3494 = sst [smem:[#allocation24_spill]] %s3478_s0 }
   0x2   :  { %3495 = sst [smem:[#allocation25_spill]] %s3482_s4 }
   0x3   :  { %3496 = sst [smem:[#allocation26_spill]] %s3484_s6 }
   0x4   :  { %3497 = sst [smem:[#allocation27_spill]] %s3485_s7 }
   0x5   :  { %13 = vsyncpa [#allocation3], 0 }
   0x6   :  { %15 = vsyncpa [#allocation3 + $0x1], 0 }
   0x7   :  { %16 = vsyncpa [#allocation6], 0 }
   0x8   :  { %18 = vsyncpa [#allocation6 + $0x1], 0 }
   0x9   :  { %19 = vsyncpa [#allocation4], 0 }
   0xa   :  { %21 = vsyncpa [#allocation4 + $0x1], 0 }
   0xb   :  { %22 = vsyncpa [#allocation10], 0 }
   0xc   :  { %24 = vsyncpa [#allocation10 + $0x1], 0  ;;  %s2711_s24 = smov 0   ;;  %s2713_s25 = smov 0  }
   0xd   :  { %s2715_s26 = smov 0   ;;  %s2717_s27 = smov 0  }
   0xe   :  { %s2719_s28 = smov 0   ;;  %s2721_s29 = smov 0  }
   0xf   :  { %s2723_s30 = smov 0   ;;  %s2725_s8 = smov 0  }
  0x10 LB: > { %3498 = sst [smem:[#allocation16_spill]] %s2623_s24  ;;  %s2752_s9 = sadd.s32 4294967295, %s2651_s8   ;;  %s2651_s8 = sphi %s2725_s8, %s30_s8   ;;  %s2647_s30 = sphi %s2723_s30, %s3532_s30   ;;  %s2643_s29 = sphi %s2721_s29, %s3531_s29   ;;  %s2639_s28 = sphi %s2719_s28, %s3530_s28   ;;  %s2635_s27 = sphi %s2717_s27, %s3529_s27   ;;  %s2631_s26 = sphi %s2715_s26, %s3528_s26   ;;  %s2627_s25 = sphi %s2713_s25, %s3527_s25   ;;  %s2623_s24 = sphi %s2711_s24, %s3526_s24  }
  0x11   : > { %3499 = sst [smem:[#allocation17_spill]] %s2635_s27  ;;  %s2138_s10 = sadd.s32 4294967294, %s2651_s8  }
  0x12   : > { %3500 = sst [smem:[#allocation18_spill]] %s2639_s28  ;;  %p64_p0 = scmp.ne.s32.totalorder %s2627_s25, %s2623_s24 }
  0x13   : > { %p65_p1 = scmp.eq.s32.totalorder %s2752_s9, 0  ;;  %p208_p3 = scmp.eq.s32.totalorder %s2138_s10, 3 }
  0x14   : > { %p2139_p5 = scmp.ge.s32.totalorder %s2651_s8, 1  ;;  %p243_p7 = scmp.lt.s32.totalorder %s2651_s8, 5 }
  0x15   : > { %p2761_p4 = por %p65_p1, %p64_p0  ;;  %p2766_p6 = por %p208_p3, %p64_p0 }
  0x16   : > { %p2771_p8 = pnand %p2139_p5, %p243_p7  ;;  %s2653_s14 = smov [#allocation7]  }
  0x17   : > { %s3502_s12 = scalar_select %p2766_p6, 1, 0 }
  0x18   : > { %s261_s15 = sshll.u32 %s2653_s14, 4  ;;  %p2230_p9 = pneg %p2771_p8  ;;  %s262_s15 = int_to_ptr.vmem [resolvable:$true] %s261_s15 }
  0x19   : > { %3503 = sst [smem:[#allocation19_spill]] %s3502_s12  ;;  %s2446_s16 = scalar_lea.vmem %s262_s15, 256 }
  0x1a   : > { %p2231_p10 = pnand %p2230_p9, %p65_p1  ;;  %p2447_p12 = scmp.ne.s32.totalorder %s262_s15, %s2446_s16 }
  0x1b   : > { %p2454_p3 = scmp.lt.s32.totalorder %s262_s15, %s262_s15  ;;  %p2455_p2 = scmp.lt.s32.totalorder %s2446_s16, %s2446_s16 }
  0x1c   : > { %p2437_p11 = pneg %p2231_p10 }
  0x1d   : > { %p2456_p6 = por %p2455_p2, %p2454_p3 }
  0x1e   : > { %p2449_p13 = pnand %p2447_p12, %p2437_p11 }
  0x20   : > { %p2450_p0 = pneg %p2449_p13 }
  0x22   : > { %p2457_p5 = pnand %p2456_p6, %p2450_p0 }
  0x24   : > { %2460 = shalt.err (!%p2457_p5)
}
  0x25   : > { %s2654_s17 = smov 64   ;;  %s2655_s18 = smov 4  }
  0x26   : > { %s3505_s4 = sld [smem:[#allocation25_spill]]  ;;  %s39_s21 = sadd.s32 1, %s2643_s29 }
  0x27   : > { %p40_p2 = scmp.ge.s32.totalorder %s39_s21, 2  ;;  %s42_s22 = sadd.s32 1, %s2647_s30 }
  0x28   : > { %s51_s23 = sadd.s32 1, %s2631_s26  ;;  %p58_p6 = scmp.ne.s32.totalorder %s2631_s26, %s2627_s25 }
  0x29   : > { %s3534_s21 = smov (%p40_p2, %s39_s21), 0  ;;  %s3536_s22 = smov (!%p40_p2, %s42_s22), %s2647_s30 }
  0x2a   : > { %3506 = sst [smem:[#allocation20_spill]] %s3534_s21  ;;  %s47_s10 = ssub.s32 %s2643_s29, %s3534_s21 }
  0x2b   : > { %p59_p7 = scmp.eq.s32.totalorder %s2651_s8, 0  ;;  %p44_p9 = scmp.ge.s32.totalorder %s3536_s22, 2 }
  0x2c   : > { %2233 = dma.hbm_to_vmem [thread:$0]  (!%p2231_p10), %s3505_s4, 256, %s262_s15, [#allocation6], %s2654_s17, %s2654_s17, %s2655_s18  }
  0x2d   : > { %p3507_p11 = scmp.eq.s32.totalorder %s2752_s9, 3  ;;  %p2799_p10 = por %p59_p7, %p58_p6 }
  0x2e   : > { %p2249_p13 = scmp.lt.s32.totalorder %s2651_s8, 4  ;;  %s3538_s22 = smov (%p44_p9, %s3536_s22), 0 }
  0x2f   : > { %p2795_p12 = por %p3507_p11, %p58_p6  ;;  %3511 = sst [smem:[#allocation22_spill]] %s3538_s22 }
  0x30   : > { %s2807_s16 = sand.u32 1, %s2631_s26   ;;  %s2181_s17 = sshll.u32 %s2643_s29, 4 }
  0x31   : > { %s3508_s14 = scalar_select %p2795_p12, 1, 0 }
  0x32   : > { %s46_s18 = ssub.s32 %s2647_s30, %s3538_s22  ;;  %s2142_s20 = sshll.u32 %s2807_s16, 7 }
  0x33   : > { %3509 = sst [smem:[#allocation21_spill]] %s3508_s14  ;;  %s48_s19 = sor.u32 %s47_s10, %s46_s18 }
  0x34   : > { %p49_p0 = scmp.eq.s32.totalorder %s48_s19, 0  ;;  %s2145_s4 = sshll.u32 %s2647_s30, 5 }
  0x35   : > { %s282_s21 = scalar_lea.vmem [#allocation2], %s2142_s20  ;;  %s289_s7 = sadd.s32 %s2181_s17, %s2145_s4 }
  0x36   : > { %s292_s12 = sshll.u32 %s282_s21, 4  ;;  %s2146_s6 = sshll.u32 %s289_s7, 7  ;;  %s293_s12 = int_to_ptr.vmem [resolvable:$true] %s292_s12 }
  0x37   : > { %s2815_s24 = scalar_select %p49_p0, %s2631_s26, %s51_s23  }
  0x38   : > { %p2821_p3 = pnand %p2249_p13, %p2799_p10  ;;  %s3514_s0 = sld [smem:[#allocation24_spill]] }
  0x39   : > { %3512 = sst [smem:[#allocation23_spill]] %s2815_s24  ;;  %s279_s18 = scalar_lea.sflag [#allocation3], %s2807_s16 }
  0x3a   : > { %p2463_p5 = pneg %p2821_p3  ;;  %s2474_s21 = scalar_lea.vmem %s293_s12, 2048 }
  0x3b   : > { %p2475_p2 = scmp.ne.s32.totalorder %s293_s12, %s2474_s21  ;;  %s2656_s4 = smov [#allocation2]  }
  0x3c   : > { %s2479_s7 = sshll.u32 %s2656_s4, 4  ;;  %s2480_s7 = int_to_ptr.vmem [resolvable:$false] %s2479_s7 }
  0x3d   : > { %p2477_p6 = pnand %p2475_p2, %p2463_p5  ;;  %s2481_s23 = scalar_lea.vmem %s2480_s7, 4096 }
  0x3e   : > { %s291_s10 = scalar_lea.hbm %s3514_s0, %s2146_s6  ;;  %p2482_p9 = scmp.lt.s32.totalorder %s293_s12, %s2480_s7 }
  0x3f   : > { %p2478_p7 = pneg %p2477_p6  ;;  %p2483_p11 = scmp.lt.s32.totalorder %s2481_s23, %s2474_s21 }
  0x41   : > { %p2484_p10 = por %p2483_p11, %p2482_p9 }
  0x43   : > { %p2485_p13 = pnand %p2484_p10, %p2478_p7 }
  0x45   : > { %2488 = shalt.err (!%p2485_p13)
}
  0x46   : > { %s2657_s27 = smov 128   ;;  %s2658_s6 = smov 8  }
  0x47   : > { %2237 = dma.hbm_to_vmem [thread:$0]  (!%p2821_p3), %s291_s10, 2048, %s293_s12, %s279_s18, %s2657_s27, %s2657_s27, %s2658_s6  }
  0x48   : > { %s302_s28 = sand.u32 1, %s2651_s8   ;;  %s2147_s15 = sshll.u32 %s2807_s16, 3 }
  0x49   : > { %s2148_s17 = sshll.u32 %s2647_s30, 1  ;;  %s306_s19 = scalar_lea.vmem [#allocation5], %s2147_s15 }
  0x4a   : > { %s315_s20 = sshll.u32 %s306_s19, 4  ;;  %s311_s4 = sadd.s32 %s2643_s29, %s2148_s17  ;;  %s316_s20 = int_to_ptr.vmem [resolvable:$true] %s315_s20 }
  0x4b   : > { %s2149_s21 = sshll.u32 %s311_s4, 7  ;;  %s303_s22 = scalar_lea.sflag [#allocation6], %s302_s28 }
  0x4c   : > { %s313_s0 = scalar_lea.hbm %s3479_s1, %s2149_s21  ;;  %s2502_s24 = scalar_lea.vmem %s316_s20, 128 }
  0x4d   : > { %p2503_p0 = scmp.ne.s32.totalorder %s316_s20, %s2502_s24  ;;  %s2659_s12 = smov [#allocation5]  }
  0x4e   : > { %s2507_s10 = sshll.u32 %s2659_s12, 4  ;;  %s2508_s10 = int_to_ptr.vmem [resolvable:$false] %s2507_s10 }
  0x4f   : > { %p2505_p2 = pnand %p2503_p0, %p2463_p5  ;;  %s2509_s16 = scalar_lea.vmem %s2508_s10, 256 }
  0x50   : > { %p2510_p7 = scmp.lt.s32.totalorder %s316_s20, %s2508_s10  ;;  %p2511_p9 = scmp.lt.s32.totalorder %s2509_s16, %s2502_s24 }
  0x51   : > { %p2506_p6 = pneg %p2505_p2 }
  0x52   : > { %p2512_p11 = por %p2511_p9, %p2510_p7 }
  0x54   : > { %p2513_p10 = pnand %p2512_p11, %p2506_p6 }
  0x56   : > { %2516 = shalt.err (!%p2513_p10)
}
  0x57   : > { %2240 = dma.hbm_to_vmem [thread:$0]  (!%p2821_p3), %s313_s0, 128, %s316_s20, %s303_s22  }
  0x58   : > { %324 = sbr.rel (%p2771_p8) target bundleno = 1079 (0x437), region = 44  ;;  %s2851_s18 = sand.u32 (!%p2771_p8), 1, %s2627_s25  }
  0x59   : > { %s2151_s27 = sshll.u32 (!%p2771_p8), %s2851_s18, 7  ;;  %s327_s6 = scalar_lea.sflag (!%p2771_p8), [#allocation3], %s2851_s18 }
  0x5a   : > { %s2855_s28 = scalar_lea.vmem (!%p2771_p8), [#allocation2], %s2151_s27 }
  0x5d   : > { %2602 = dma.done.wait (%p2761_p4), %s327_s6, 2048  }
  0x5e   : > { %2604 = vsyncadd (%p2761_p4), %s327_s6, 4294965248  ;;  %s335_s0 = sand.u32 1, %s2752_s9   ;;  %s2863_s24 = sshll.u32 %s2851_s18, 3 }
  0x5f   : > { %s336_s13 = scalar_lea.sflag [#allocation6], %s335_s0  ;;  %s339_s22 = scalar_lea.vmem [#allocation5], %s2863_s24 }
  0x60   : > { %2606 = dma.done.wait (%p2761_p4), %s336_s13, 128  }
  0x61   : > { %2608 = vsyncadd (%p2761_p4), %s336_s13, 4294967168 }
  0x62   : > { %2610 = dma.done.wait (%p65_p1), [#allocation6], 256  }
  0x63   : > { %2612 = vsyncadd (%p65_p1), [#allocation6], 4294967040  ;;  %vm402_vm0 = vcmask 261120   ;;  %v386_v0 = vld [vmem:[%s2855_s28] sm:$0xff]  ;;  %v387_v2 = vld [vmem:[%s2855_s28 + $0x8] sm:$0xff]  ;;  %s2660_s20 = smov 112  }
  0x64   : > { %v394_v1 = vld [vmem:[%s2855_s28 + $0x40] sm:$0xff]  ;;  %v403_v3 = vsel %vm402_vm0, %v386_v0, 0.0  ;;  %v395_v5 = vld [vmem:[%s2855_s28 + $0x48] sm:$0xff]  ;;  %v406_v6 = vsel %vm402_vm0, %v387_v2, 0.0  ;;  %v388_v8 = vld [vmem:[%s2855_s28 + $0x10] sm:$0xff]  ;;  %s2663_s4 = smov 32  }
  0x65   : > { %v427_v4 = vsel %vm402_vm0, %v394_v1, 0.0  ;;  %404 = vadd.xlane.f32.xlu0 %v403_v3  ;;  %v430_v7 = vsel %vm402_vm0, %v395_v5, 0.0  ;;  %v389_v9 = vld [vmem:[%s2855_s28 + $0x18] sm:$0xff]  ;;  %v409_v10 = vsel %vm402_vm0, %v388_v8, 0.0  ;;  %v2887_v12 = vld [vmem:[%s2855_s28 + $0x50] sm:$0xff]  ;;  %v2897_v16 = vld [vmem:[%s2855_s28 + $0x20] sm:$0xff] }
  0x66   : > { %428 = vadd.xlane.f32.xlu1 %v427_v4  ;;  %v412_v11 = vsel %vm402_vm0, %v389_v9, 0.0  ;;  %v2890_v13 = vld [vmem:[%s2855_s28 + $0x58] sm:$0xff]  ;;  %v433_v14 = vsel %vm402_vm0, %v2887_v12, 0.0  ;;  %v2900_v17 = vld [vmem:[%s2855_s28 + $0x28] sm:$0xff]  ;;  %v415_v18 = vsel %vm402_vm0, %v2897_v16, 0.0  ;;  %v2907_v20 = vld [vmem:[%s2855_s28 + $0x60] sm:$0xff] }
  0x67   : > { %v436_v15 = vsel %vm402_vm0, %v2890_v13, 0.0  ;;  %v418_v19 = vsel %vm402_vm0, %v2900_v17, 0.0  ;;  %v2910_v21 = vld [vmem:[%s2855_s28 + $0x68] sm:$0xff]  ;;  %v439_v22 = vsel %vm402_vm0, %v2907_v20, 0.0  ;;  %v2917_v24 = vld [vmem:[%s2855_s28 + $0x30] sm:$0xff]  ;;  %v2920_v25 = vld [vmem:[%s2855_s28 + $0x38] sm:$0xff] }
  0x68   : > { %v442_v23 = vsel %vm402_vm0, %v2910_v21, 0.0  ;;  %v421_v26 = vsel %vm402_vm0, %v2917_v24, 0.0  ;;  %v424_v27 = vsel %vm402_vm0, %v2920_v25, 0.0  ;;  %v2927_v28 = vld [vmem:[%s2855_s28 + $0x70] sm:$0xff]  ;;  %v2930_v29 = vld [vmem:[%s2855_s28 + $0x78] sm:$0xff]  ;;  %s2664_s21 = smov 16  }
  0x69   : > { %407 = vadd.xlane.f32.xlu0 %v406_v6  ;;  %v445_v30 = vsel %vm402_vm0, %v2927_v28, 0.0  ;;  %v448_v31 = vsel %vm402_vm0, %v2930_v29, 0.0  ;;  %s2665_s7 = smov 64   ;;  %vm1243_vm1 = vcmask 130048   ;;  %s2666_s23 = smov 80   ;;  %vm1246_vm2 = vcmask 392192  }
  0x6a   : > { %431 = vadd.xlane.f32.xlu1 %v430_v7  ;;  %s2667_s12 = smov 48   ;;  %s2668_s10 = smov 96   ;;  %vm1248_vm3 = vcmask 523264   ;;  %vm1250_vm4 = vcmask 654336   ;;  %vm1252_vm5 = vcmask 785408   ;;  %vm1254_vm6 = vcmask 916480  }
  0x6b   : > { %s3515_s16 = sld [smem:[#allocation17_spill]] }
  0x6c   : > { %s3516_s27 = sld [smem:[#allocation18_spill]] }
  0x6d   : > { %410 = vadd.xlane.f32.xlu0 %v409_v10  ;;  %s3518_s17 = sld [smem:[#allocation26_spill]] }
  0x6e   : > { %413 = vadd.xlane.f32.xlu1 %v412_v11 }
  0x71   : > { %434 = vadd.xlane.f32.xlu0 %v433_v14  ;;  %s2173_s6 = sshll.u32 %s3515_s16, 1 }
  0x72   : > { %437 = vadd.xlane.f32.xlu1 %v436_v15  ;;  %s2174_s28 = sshll.u32 %s3516_s27, 2 }
  0x73   : > { %s3363_s0 = sadd.s32 %s2174_s28, %s2173_s6 }
  0x74   : > { %s2175_s13 = sshll.u32 %s3363_s0, 6 }
  0x75   : > { %416 = vadd.xlane.f32.xlu0 %v415_v18  ;;  %s3380_s19 = scalar_lea.hbm %s3518_s17, %s2175_s13 }
  0x76   : > { %419 = vadd.xlane.f32.xlu1 %v418_v19 }
  0x79   : > { %440 = vadd.xlane.f32.xlu0 %v439_v22 }
  0x7a   : > { %443 = vadd.xlane.f32.xlu1 %v442_v23 }
  0x7d   : > { %422 = vadd.xlane.f32.xlu0 %v421_v26 }
  0x7e   : > { %425 = vadd.xlane.f32.xlu1 %v424_v27 }
  0x81   : > { %446 = vadd.xlane.f32.xlu0 %v445_v30 }
  0x82   : > { %449 = vadd.xlane.f32.xlu1 %v448_v31 }
  0xee   : > { %v405_v32 = vpop.xlane.xlu0 %404 }
  0xef   : > { %v429_v33 = vpop.xlane.xlu1 %428  ;;  %v452_v34 = vmul.f32 0.03125, %v405_v32 }
  0xf0   : > { %v460_v35 = vmul.f32 0.03125, %v429_v33 }
  0xf1   : > { %v2936_v36 = vsub.f32 %v386_v0, %v452_v34 }
  0xf2   : > { %v2938_v37 = vsub.f32 %v394_v1, %v460_v35  ;;  %v408_v38 = vpop.xlane.xlu0 %407 }
  0xf3   : > { %v432_v39 = vpop.xlane.xlu1 %431  ;;  %v453_v40 = vmul.f32 0.03125, %v408_v38  ;;  %v484_v42 = vmul.f32 %v2936_v36, %v2936_v36 }
  0xf4   : > { %v461_v41 = vmul.f32 0.03125, %v432_v39  ;;  %v492_v43 = vmul.f32 %v2938_v37, %v2938_v37 }
  0xf5   : > { %v2944_v44 = vsub.f32 %v387_v2, %v453_v40  ;;  %v500_v46 = vsel %vm402_vm0, %v484_v42, 0.0 }
  0xf6   : > { %v2946_v45 = vsub.f32 %v395_v5, %v461_v41  ;;  %501 = vadd.xlane.f32.xlu0 %v500_v46  ;;  %v411_v47 = vpop.xlane.xlu0 %410  ;;  %v524_v49 = vsel %vm402_vm0, %v492_v43, 0.0 }
  0xf7   : > { %v414_v48 = vpop.xlane.xlu1 %413  ;;  %v454_v50 = vmul.f32 0.03125, %v411_v47  ;;  %v485_v52 = vmul.f32 %v2944_v44, %v2944_v44 }
  0xf8   : > { %v455_v51 = vmul.f32 0.03125, %v414_v48  ;;  %v493_v53 = vmul.f32 %v2946_v45, %v2946_v45 }
  0xf9   : > { %v2954_v54 = vsub.f32 %v388_v8, %v454_v50  ;;  %v503_v56 = vsel %vm402_vm0, %v485_v52, 0.0 }
  0xfa   : > { %v2956_v55 = vsub.f32 %v389_v9, %v455_v51  ;;  %525 = vadd.xlane.f32.xlu0 %v524_v49  ;;  %504 = vadd.xlane.f32.xlu1 %v503_v56  ;;  %v435_v57 = vpop.xlane.xlu0 %434  ;;  %v527_v59 = vsel %vm402_vm0, %v493_v53, 0.0  ;;  %v2402_v53 = vld [vmem:[#allocation7] sm:$0xff]   ;;  %v811_v56 = vlaneseq }
  0xfb   : > { %v438_v58 = vpop.xlane.xlu1 %437  ;;  %v462_v60 = vmul.f32 0.03125, %v435_v57  ;;  %v486_v62 = vmul.f32 %v2954_v54, %v2954_v54 }
  0xfc   : > { %v463_v61 = vmul.f32 0.03125, %v438_v58  ;;  %v487_v63 = vmul.f32 %v2956_v55, %v2956_v55  ;;  %v3026_v57 = vshrl.u32 %v811_v56, 7  ;;  %v810_v58 = vld [vmem:[%s339_s22] sm:$0xff]  ;;  %s376_s22 = scalar_lea.vmem [#allocation8], %s2863_s24 }
  0xfd   : > { %v2965_v0 = vsub.f32 %v2887_v12, %v462_v60  ;;  %v506_v2 = vsel %vm402_vm0, %v486_v62, 0.0  ;;  %v3042_v56 = vld [vmem:[%s3480_s2] ss:$0 sm:$0xff]  ;;  %s1965_s9 = sshll.u32 %s376_s22, 4  ;;  %s3382_s9 = int_to_ptr.vmem [resolvable:$true] %s1965_s9 }
  0xfe   : > { %v2968_v1 = vsub.f32 %v2890_v13, %v463_v61  ;;  %528 = vadd.xlane.f32.xlu1 %v527_v59  ;;  %507 = vadd.xlane.f32.xlu0 %v506_v2  ;;  %v417_v3 = vpop.xlane.xlu0 %416  ;;  %v509_v5 = vsel %vm402_vm0, %v487_v63, 0.0  ;;  %v824_v59 = vsub.s32 1, %v3026_v57  ;;  %v835_v60 = vsub.s32 2, %v3026_v57 }
  0xff   : > { %v420_v4 = vpop.xlane.xlu1 %419  ;;  %v456_v6 = vmul.f32 0.03125, %v417_v3  ;;  %v494_v8 = vmul.f32 %v2965_v0, %v2965_v0  ;;  %v813_v61 = vsub.s32 0, %v3026_v57  ;;  %v857_v62 = vsub.s32 4, %v3026_v57 }
 0x100   : > { %v457_v7 = vmul.f32 0.03125, %v420_v4  ;;  %v495_v9 = vmul.f32 %v2968_v1, %v2968_v1  ;;  %v825_v63 = vrot.slane %v810_v58, %v824_v59  ;;  %v836_v3 = vrot.slane %v810_v58, %v835_v60 }
 0x101   : > { %v2977_v10 = vsub.f32 %v2897_v16, %v456_v6  ;;  %v530_v12 = vsel %vm402_vm0, %v494_v8, 0.0  ;;  %v814_v2 = vrot.slane %v810_v58, %v813_v61  ;;  %v846_v4 = vsub.s32 3, %v3026_v57 }
 0x102   : > { %v2980_v11 = vsub.f32 %v2900_v17, %v457_v7  ;;  %510 = vadd.xlane.f32.xlu1 %v509_v5  ;;  %531 = vadd.xlane.f32.xlu0 %v530_v12  ;;  %v441_v13 = vpop.xlane.xlu0 %440  ;;  %v533_v15 = vsel %vm402_vm0, %v495_v9, 0.0  ;;  %v858_v5 = vrot.slane %v810_v58, %v857_v62  ;;  %v879_v6 = vsub.s32 6, %v3026_v57 }
 0x103   : > { %v444_v14 = vpop.xlane.xlu1 %443  ;;  %v464_v18 = vmul.f32 0.03125, %v441_v13  ;;  %v488_v22 = vmul.f32 %v2977_v10, %v2977_v10  ;;  %v847_v7 = vrot.slane %v810_v58, %v846_v4  ;;  %v868_v8 = vsub.s32 5, %v3026_v57 }
 0x104   : > { %v465_v19 = vmul.f32 0.03125, %v444_v14  ;;  %v489_v16 = vmul.f32 %v2980_v11, %v2980_v11  ;;  %v880_v9 = vrot.slane %v810_v58, %v879_v6  ;;  %v890_v13 = vsub.s32 7, %v3026_v57 }
 0x105   : > { %v2989_v23 = vsub.f32 %v2907_v20, %v464_v18  ;;  %v512_v26 = vsel %vm402_vm0, %v488_v22, 0.0  ;;  %v869_v12 = vrot.slane %v810_v58, %v868_v8 }
 0x106   : > { %v2992_v17 = vsub.f32 %v2910_v21, %v465_v19  ;;  %534 = vadd.xlane.f32.xlu1 %v533_v15  ;;  %513 = vadd.xlane.f32.xlu0 %v512_v26  ;;  %v423_v27 = vpop.xlane.xlu0 %422  ;;  %v515_v31 = vsel %vm402_vm0, %v489_v16, 0.0  ;;  %v891_v14 = vrot.slane %v810_v58, %v890_v13 }
 0x107   : > { %v426_v30 = vpop.xlane.xlu1 %425  ;;  %v458_v32 = vmul.f32 0.03125, %v423_v27  ;;  %v496_v34 = vmul.f32 %v2989_v23, %v2989_v23 }
 0x108   : > { %v459_v33 = vmul.f32 0.03125, %v426_v30  ;;  %v497_v20 = vmul.f32 %v2992_v17, %v2992_v17 }
 0x109   : > { %v3001_v35 = vsub.f32 %v2917_v24, %v458_v32  ;;  %v536_v38 = vsel %vm402_vm0, %v496_v34, 0.0 }
 0x10a   : > { %v3004_v21 = vsub.f32 %v2920_v25, %v459_v33  ;;  %516 = vadd.xlane.f32.xlu1 %v515_v31  ;;  %537 = vadd.xlane.f32.xlu0 %v536_v38  ;;  %v447_v39 = vpop.xlane.xlu0 %446  ;;  %v539_v41 = vsel %vm402_vm0, %v497_v20, 0.0 }
 0x10b   : > { %v450_v40 = vpop.xlane.xlu1 %449  ;;  %v466_v42 = vmul.f32 0.03125, %v447_v39  ;;  %v490_v46 = vmul.f32 %v3001_v35, %v3001_v35 }
 0x10c   : > { %v467_v43 = vmul.f32 0.03125, %v450_v40  ;;  %v491_v24 = vmul.f32 %v3004_v21, %v3004_v21 }
 0x10d   : > { %v3013_v47 = vsub.f32 %v2927_v28, %v466_v42  ;;  %v518_v48 = vsel %vm402_vm0, %v490_v46, 0.0 }
 0x10e   : > { %v3016_v25 = vsub.f32 %v2930_v29, %v467_v43  ;;  %540 = vadd.xlane.f32.xlu1 %v539_v41  ;;  %519 = vadd.xlane.f32.xlu0 %v518_v48  ;;  %v521_v49 = vsel %vm402_vm0, %v491_v24, 0.0  ;;  %v2401_v29 = vld [vmem:[#allocation7 + $0x8] sm:$0xff]  }
 0x10f   : > { %v498_v50 = vmul.f32 %v3013_v47, %v3013_v47  ;;  %2194 = vmatprep.subr.bf16.mxu0 %v2401_v29  ;;  %2214 = vmatprep.subr.bf16.mxu1 %v2401_v29 }
 0x110   : > { %v499_v51 = vmul.f32 %v3016_v25, %v3016_v25  ;;  %2195 = vmatpush3.bf16.msra.mxu0 %v2401_v29  ;;  %2216 = vmatpush3.bf16.msra.mxu1 %v2401_v29 }
 0x111   : > { %v542_v52 = vsel %vm402_vm0, %v498_v50, 0.0  ;;  %2196 = vmatprep.subr.bf16.mxu0 %v2402_v53  ;;  %2215 = vmatprep.subr.bf16.mxu1 %v2402_v53 }
 0x112   : > { %522 = vadd.xlane.f32.xlu1 %v521_v49  ;;  %543 = vadd.xlane.f32.xlu0 %v542_v52  ;;  %v545_v28 = vsel %vm402_vm0, %v499_v51, 0.0 }
 0x114   : > { %2197 = vmatpush3.bf16.msra.mxu0 %v2402_v53  ;;  %2217 = vmatpush3.bf16.msra.mxu1 %v2402_v53 }
 0x116   : > { %546 = vadd.xlane.f32.xlu1 %v545_v28 }
 0x127   : > { %827 = vbcast.lane.b32.xlu1 %v825_v63, 256 }
 0x128   : > { %816 = vbcast.lane.b32.xlu0 %v814_v2, 256 }
 0x12b   : > { %838 = vbcast.lane.b32.xlu1 %v836_v3, 256 }
 0x12c   : > { %860 = vbcast.lane.b32.xlu0 %v858_v5, 256 }
 0x12f   : > { %849 = vbcast.lane.b32.xlu1 %v847_v7, 256 }
 0x130   : > { %882 = vbcast.lane.b32.xlu0 %v880_v9, 256 }
 0x133   : > { %871 = vbcast.lane.b32.xlu1 %v869_v12, 256 }
 0x134   : > { %820 = vbcast.lane.b32.xlu0 %v814_v2, 264 }
 0x137   : > { %893 = vbcast.lane.b32.xlu1 %v891_v14, 256 }
 0x138   : > { %842 = vbcast.lane.b32.xlu0 %v836_v3, 264 }
 0x13b   : > { %831 = vbcast.lane.b32.xlu1 %v825_v63, 264 }
 0x13c   : > { %864 = vbcast.lane.b32.xlu0 %v858_v5, 264 }
 0x13f   : > { %853 = vbcast.lane.b32.xlu1 %v847_v7, 264 }
 0x140   : > { %886 = vbcast.lane.b32.xlu0 %v880_v9, 264 }
 0x143   : > { %875 = vbcast.lane.b32.xlu1 %v869_v12, 264 }
 0x147   : > { %897 = vbcast.lane.b32.xlu1 %v891_v14, 264 }
 0x17f   : > { %v502_v15 = vpop.xlane.xlu0 %501 }
 0x180   : > { %v548_v18 = vmul.f32 0.03125, %v502_v15 }
 0x182   : > { %v564_v19 = vadd.f32 1e-05, %v548_v18 }
 0x183   : > { %v505_v22 = vpop.xlane.xlu1 %504  ;;  %v526_v16 = vpop.xlane.xlu0 %525 }
 0x184   : > { %2403 = vrsqrt.f32 %v564_v19  ;;  %v549_v26 = vmul.f32 0.03125, %v505_v22  ;;  %v556_v27 = vmul.f32 0.03125, %v526_v16 }
 0x186   : > { %v565_v30 = vadd.f32 1e-05, %v549_v26  ;;  %v572_v31 = vadd.f32 1e-05, %v556_v27 }
 0x187   : > { %v529_v32 = vpop.xlane.xlu1 %528  ;;  %v508_v33 = vpop.xlane.xlu0 %507 }
 0x188   : > { %2405 = vrsqrt.f32 %v565_v30  ;;  %v557_v34 = vmul.f32 0.03125, %v529_v32  ;;  %v550_v20 = vmul.f32 0.03125, %v508_v33 }
 0x189   : > { %2407 = vrsqrt.f32 %v572_v31 }
 0x18a   : > { %v573_v38 = vadd.f32 1e-05, %v557_v34  ;;  %v566_v39 = vadd.f32 1e-05, %v550_v20 }
 0x18b   : > { %v511_v40 = vpop.xlane.xlu1 %510  ;;  %v532_v41 = vpop.xlane.xlu0 %531 }
 0x18c   : > { %2409 = vrsqrt.f32 %v573_v38  ;;  %v551_v42 = vmul.f32 0.03125, %v511_v40  ;;  %v558_v43 = vmul.f32 0.03125, %v532_v41 }
 0x18d   : > { %2411 = vrsqrt.f32 %v566_v39 }
 0x18e   : > { %v567_v46 = vadd.f32 1e-05, %v551_v42  ;;  %v574_v24 = vadd.f32 1e-05, %v558_v43 }
 0x18f   : > { %v535_v48 = vpop.xlane.xlu1 %534  ;;  %v514_v49 = vpop.xlane.xlu0 %513 }
 0x190   : > { %2413 = vrsqrt.f32 %v567_v46  ;;  %v559_v50 = vmul.f32 0.03125, %v535_v48  ;;  %v552_v51 = vmul.f32 0.03125, %v514_v49 }
 0x191   : > { %v2404_v52 = vpop.eup %2403  ;;  %2415 = vrsqrt.f32 %v574_v24 }
 0x192   : > { %v575_v28 = vadd.f32 1e-05, %v559_v50  ;;  %v568_v29 = vadd.f32 1e-05, %v552_v51  ;;  %v596_v53 = vmul.f32 %v2404_v52, %v2936_v36  ;;  %v3049_v36 = vld [vmem:[%s3481_s3] ss:$0 sm:$0xff] }
 0x193   : > { %v517_v58 = vpop.xlane.xlu1 %516  ;;  %v538_v59 = vpop.xlane.xlu0 %537 }
 0x194   : > { %2417 = vrsqrt.f32 %v575_v28  ;;  %v553_v60 = vmul.f32 0.03125, %v517_v58  ;;  %v560_v61 = vmul.f32 0.03125, %v538_v59  ;;  %v619_v63 = vmul.f32 %v3042_v56, %v596_v53 }
 0x195   : > { %v2406_v62 = vpop.eup %2405  ;;  %2419 = vrsqrt.f32 %v568_v29 }
 0x196   : > { %v2408_v2 = vpop.eup %2407  ;;  %v569_v3 = vadd.f32 1e-05, %v553_v60  ;;  %v576_v4 = vadd.f32 1e-05, %v560_v61  ;;  %v597_v5 = vmul.f32 %v2406_v62, %v2944_v44  ;;  %v642_v15 = vadd.f32 %v3049_v36, %v619_v63 }
 0x197   : > { %v541_v6 = vpop.xlane.xlu1 %540  ;;  %v520_v7 = vpop.xlane.xlu0 %519  ;;  %v604_v8 = vmul.f32 %v2408_v2, %v2938_v37 }
 0x198   : > { %2421 = vrsqrt.f32 %v569_v3  ;;  %v561_v9 = vmul.f32 0.03125, %v541_v6  ;;  %v554_v12 = vmul.f32 0.03125, %v520_v7  ;;  %v620_v13 = vmul.f32 %v3042_v56, %v597_v5 }
 0x199   : > { %v2410_v14 = vpop.eup %2409  ;;  %2423 = vrsqrt.f32 %v576_v4  ;;  %v627_v37 = vmul.f32 %v3042_v56, %v604_v8 }
 0x19a   : > { %v2412_v18 = vpop.eup %2411  ;;  %v577_v44 = vadd.f32 1e-05, %v561_v9  ;;  %v570_v19 = vadd.f32 1e-05, %v554_v12  ;;  %v643_v22 = vadd.f32 %v3049_v36, %v620_v13  ;;  %v605_v16 = vmul.f32 %v2410_v14, %v2946_v45 }
 0x19b   : > { %v523_v26 = vpop.xlane.xlu1 %522  ;;  %v544_v27 = vpop.xlane.xlu0 %543  ;;  %v598_v30 = vmul.f32 %v2412_v18, %v2954_v54  ;;  %v650_v54 = vadd.f32 %v3049_v36, %v627_v37 }
 0x19c   : > { %2425 = vrsqrt.f32 %v577_v44  ;;  %v555_v31 = vmul.f32 0.03125, %v523_v26  ;;  %v562_v32 = vmul.f32 0.03125, %v544_v27  ;;  %v658_v33 = vpack.c.bf16 %v643_v22, %v642_v15 }
 0x19d   : > { %v2414_v34 = vpop.eup %2413  ;;  %2427 = vrsqrt.f32 %v570_v19  ;;  %v628_v20 = vmul.f32 %v3042_v56, %v605_v16  ;;  %v621_v38 = vmul.f32 %v3042_v56, %v598_v30 }
 0x19e   : > { %v2416_v39 = vpop.eup %2415  ;;  %v571_v40 = vadd.f32 1e-05, %v555_v31  ;;  %v578_v41 = vadd.f32 1e-05, %v562_v32  ;;  %2198 = vmatprep.mubr.msk.bf16.mxu0 %vm402_vm0, %v658_v33  ;;  %v599_v45 = vmul.f32 %v2414_v34, %v2956_v55 }
 0x19f   : > { %v547_v42 = vpop.xlane.xlu1 %546  ;;  %v651_v43 = vadd.f32 %v3049_v36, %v628_v20  ;;  %v606_v46 = vmul.f32 %v2416_v39, %v2965_v0  ;;  %v644_v51 = vadd.f32 %v3049_v36, %v621_v38 }
 0x1a0   : > { %2429 = vrsqrt.f32 %v571_v40  ;;  %v563_v24 = vmul.f32 0.03125, %v547_v42  ;;  %v622_v48 = vmul.f32 %v3042_v56, %v599_v45  ;;  %v817_v40 = vpop.permute.xlu0 %816 }
 0x1a1   : > { %v2418_v49 = vpop.eup %2417  ;;  %2431 = vrsqrt.f32 %v578_v41  ;;  %v662_v50 = vpack.c.bf16 %v651_v43, %v650_v54  ;;  %v629_v53 = vmul.f32 %v3042_v56, %v606_v46 }
 0x1a2   : > { %v2420_v52 = vpop.eup %2419  ;;  %v579_v28 = vadd.f32 1e-05, %v563_v24  ;;  %v645_v55 = vadd.f32 %v3049_v36, %v622_v48  ;;  %v607_v29 = vmul.f32 %v2418_v49, %v2968_v1 }
 0x1a3   : > { %2206 = vmatprep.mubr.msk.bf16.mxu1 %vm402_vm0, %v662_v50  ;;  %v600_v0 = vmul.f32 %v2420_v52, %v2977_v10  ;;  %v652_v62 = vadd.f32 %v3049_v36, %v629_v53  ;;  %v828_v20 = vpop.permute.xlu1 %827 }
 0x1a4   : > { %2433 = vrsqrt.f32 %v579_v28  ;;  %v659_v58 = vpack.c.bf16 %v645_v55, %v644_v51  ;;  %v630_v59 = vmul.f32 %v3042_v56, %v607_v29  ;;  %v861_v41 = vpop.permute.xlu0 %860 }
 0x1a5   : > { %v2422_v60 = vpop.eup %2421  ;;  %v623_v2 = vmul.f32 %v3042_v56, %v600_v0 }
 0x1a6   : > { %v2424_v61 = vpop.eup %2423  ;;  %2199 = vmatmul.mubr.msk.bf16.vlgmr.msra.gmra.mxu0 %vm402_vm0, %v659_v58  ;;  %v653_v63 = vadd.f32 %v3049_v36, %v630_v59  ;;  %v601_v1 = vmul.f32 %v2422_v60, %v2980_v11 }
 0x1a7   : > { %v608_v3 = vmul.f32 %v2424_v61, %v2989_v23  ;;  %v646_v7 = vadd.f32 %v3049_v36, %v623_v2  ;;  %v3104_v38 = vpop.permute.xlu1 %838 }
 0x1a8   : > { %v663_v4 = vpack.c.bf16 %v653_v63, %v652_v62  ;;  %v624_v10 = vmul.f32 %v3042_v56, %v601_v1  ;;  %v3108_v42 = vpop.permute.xlu0 %882 }
 0x1a9   : > { %v2426_v5 = vpop.eup %2425  ;;  %v631_v12 = vmul.f32 %v3042_v56, %v608_v3 }
 0x1aa   : > { %v2428_v6 = vpop.eup %2427  ;;  %2207 = vmatmul.mubr.msk.bf16.vlgmr.msra.gmra.mxu1 %vm402_vm0, %v663_v4  ;;  %v647_v8 = vadd.f32 %v3049_v36, %v624_v10  ;;  %v609_v9 = vmul.f32 %v2426_v5, %v2992_v17  ;;  %v2661_v4 = vmov 1983009808  }
 0x1ab   : > { %v602_v11 = vmul.f32 %v2428_v6, %v3001_v35  ;;  %v654_v18 = vadd.f32 %v3049_v36, %v631_v12  ;;  %v850_v39 = vpop.permute.xlu1 %849  ;;  %v918_v10 = vunpack.c.l.s4 %v2661_v4 }
 0x1ac   : > { %v660_v13 = vpack.c.bf16 %v647_v8, %v646_v7  ;;  %v632_v23 = vmul.f32 %v3042_v56, %v609_v9  ;;  %v821_v24 = vpop.permute.xlu0 %820  ;;  %v2662_v9 = vmov 1934713408  }
 0x1ad   : > { %v2430_v14 = vpop.eup %2429  ;;  %v625_v22 = vmul.f32 %v3042_v56, %v602_v11  ;;  %v982_v12 = vunpack.c.l.s4 %v2662_v9 }
 0x1ae   : > { %v2432_v15 = vpop.eup %2431  ;;  %2202 = vmatprep.mubr.msk.bf16.mxu0 %vm402_vm0, %v660_v13  ;;  %v655_v44 = vadd.f32 %v3049_v36, %v632_v23  ;;  %v603_v19 = vmul.f32 %v2430_v14, %v3004_v21  ;;  %v919_v13 = vunpack.c.0.s8 %v918_v10 }
 0x1af   : > { %v610_v17 = vmul.f32 %v2432_v15, %v3013_v47  ;;  %v648_v27 = vadd.f32 %v3049_v36, %v625_v22 }
 0x1b0   : > { %v664_v16 = vpack.c.bf16 %v655_v44, %v654_v18  ;;  %v626_v35 = vmul.f32 %v3042_v56, %v603_v19  ;;  %v843_v61 = vpop.permute.xlu0 %842  ;;  %v983_v44 = vunpack.c.0.s8 %v982_v12 }
 0x1b1   : > { %v2434_v26 = vpop.eup %2433  ;;  %v633_v31 = vmul.f32 %v3042_v56, %v610_v17  ;;  %v3158_v17 = vsub.s32 %v919_v13, %v3026_v57 }
 0x1b2   : > { %2210 = vmatprep.mubr.msk.bf16.mxu1 %vm402_vm0, %v664_v16  ;;  %v649_v37 = vadd.f32 %v3049_v36, %v626_v35  ;;  %v611_v30 = vmul.f32 %v2434_v26, %v3016_v25  ;;  %v872_v25 = vpop.permute.xlu1 %871 }
 0x1b3   : > { %v656_v47 = vadd.f32 %v3049_v36, %v633_v31 }
 0x1b4   : > { %v661_v32 = vpack.c.bf16 %v649_v37, %v648_v27  ;;  %v634_v21 = vmul.f32 %v3042_v56, %v611_v30  ;;  %v3113_v56 = vld [vmem:[%s3483_s5] ss:$0 sm:$0xff]  ;;  %v865_v8 = vpop.permute.xlu0 %864 }
 0x1b6   : > { %2203 = vmatmul.mubr.msk.bf16.gmra.mxu0 %vm402_vm0, %v661_v32  ;;  %v657_v33 = vadd.f32 %v3049_v36, %v634_v21  ;;  %v3106_v45 = vpop.permute.xlu1 %893 }
 0x1b8   : > { %v665_v34 = vpack.c.bf16 %v657_v33, %v656_v47  ;;  %v3167_v47 = vsub.s32 %v983_v44, %v3026_v57 }
 0x1ba   : > { %2211 = vmatmul.mubr.msk.bf16.gmra.mxu1 %vm402_vm0, %v665_v34  ;;  %v832_v36 = vpop.permute.xlu1 %831 }
 0x1be   : > { %v854_v55 = vpop.permute.xlu1 %853 }
 0x1c2   : > { %v876_v5 = vpop.permute.xlu1 %875 }
 0x266   : > { %v2200_v54 = vpop.f32.mrf.mxu0 }
 0x267   : > { %v756_v43 = vadd.f32 %v2200_v54, %v3113_v56 }
 0x268   : > { %v747_v46 = vpop.f32.mrf.mxu0 }
 0x269   : > { %v3116_v48 = vmul.f32 %v828_v20, %v756_v43  ;;  %v748_v49 = vadd.f32 %v3113_v56, %v747_v46 }
 0x26a   : > { %v2201_v50 = vpop.f32.mrf.mxu0  ;;  %v2208_v51 = vpop.f32.mrf.mxu1 }
 0x26b   : > { %v3119_v52 = vmul.f32 %v817_v40, %v748_v49  ;;  %v788_v28 = vadd.f32 %v2208_v51, %v3113_v56  ;;  %1292 = vrot.lane.b32.xlu1 %v3116_v48, %s2660_s20  ;;  %v759_v0 = vadd.f32 %v2201_v50, %v3113_v56 }
 0x26c   : > { %v750_v29 = vpop.f32.mrf.mxu0  ;;  %v779_v53 = vpop.f32.mrf.mxu1 }
 0x26d   : > { %v3125_v58 = vmul.f32 %v872_v25, %v788_v28  ;;  %v780_v59 = vadd.f32 %v3113_v56, %v779_v53  ;;  %1288 = vrot.lane.b32.xlu0 %v3119_v52, %s2660_s20  ;;  %v751_v62 = vadd.f32 %v3113_v56, %v750_v29  ;;  %v3135_v2 = vmul.f32 %v832_v36, %v759_v0 }
 0x26e   : > { %v2209_v60 = vpop.f32.mrf.mxu1 }
 0x26f   : > { %v3131_v63 = vmul.f32 %v861_v41, %v780_v59  ;;  %1308 = vrot.lane.b32.xlu1 %v3125_v58, %s2660_s20  ;;  %v791_v3 = vadd.f32 %v2209_v60, %v3113_v56  ;;  %v3140_v6 = vmul.f32 %v821_v24, %v751_v62  ;;  %v898_v41 = vpop.permute.xlu1 %897 }
 0x270   : > { %v782_v1 = vpop.f32.mrf.mxu1 }
 0x271   : > { %1304 = vrot.lane.b32.xlu0 %v3131_v63, %s2660_s20  ;;  %v783_v7 = vadd.f32 %v3113_v56, %v782_v1  ;;  %v3145_v11 = vmul.f32 %v876_v5, %v791_v3 }
 0x273   : > { %1294 = vrot.lane.b32.xlu1 %v3135_v2, %s2660_s20  ;;  %v3149_v14 = vmul.f32 %v865_v8, %v783_v7 }
 0x275   : > { %1290 = vrot.lane.b32.xlu0 %v3140_v6, %s2660_s20 }
 0x276   : > { %v2204_v23 = vpop.f32.mrf.mxu0 }
 0x277   : > { %v772_v15 = vadd.f32 %v2204_v23, %v3113_v56  ;;  %1310 = vrot.lane.b32.xlu1 %v3145_v11, %s2660_s20 }
 0x278   : > { %v763_v18 = vpop.f32.mrf.mxu0 }
 0x279   : > { %v905_v19 = vmul.f32 %v850_v39, %v772_v15  ;;  %v764_v22 = vadd.f32 %v3113_v56, %v763_v18  ;;  %1306 = vrot.lane.b32.xlu0 %v3149_v14, %s2660_s20 }
 0x27a   : > { %v2205_v16 = vpop.f32.mrf.mxu0  ;;  %v2212_v35 = vpop.f32.mrf.mxu1 }
 0x27b   : > { %v931_v26 = vcombine.low %v3116_v48, %v905_v19  ;;  %v932_v27 = vcombine.high %v3116_v48, %v905_v19  ;;  %v903_v37 = vmul.f32 %v3104_v38, %v764_v22  ;;  %v775_v30 = vadd.f32 %v2205_v16, %v3113_v56  ;;  %1300 = vrot.lane.b32.xlu1 %v905_v19, %s2660_s20 }
 0x27c   : > { %v804_v31 = vadd.f32 %v2212_v35, %v3113_v56  ;;  %v766_v32 = vpop.f32.mrf.mxu0  ;;  %v795_v21 = vpop.f32.mrf.mxu1 }
 0x27d   : > { %v915_v33 = vcombine.low %v3119_v52, %v903_v37  ;;  %v916_v34 = vcombine.high %v3119_v52, %v903_v37  ;;  %1296 = vrot.lane.b32.xlu0 %v903_v37, %s2660_s20  ;;  %v906_v20 = vmul.f32 %v854_v55, %v775_v30  ;;  %v767_v39 = vadd.f32 %v3113_v56, %v766_v32  ;;  %v887_v55 = vpop.permute.xlu0 %886 }
 0x27e   : > { %v913_v38 = vmul.f32 %v3106_v45, %v804_v31  ;;  %v796_v40 = vadd.f32 %v3113_v56, %v795_v21  ;;  %v2213_v25 = vpop.f32.mrf.mxu1  ;;  %v939_v36 = vrot.slane %v931_v26, %v3158_v17  ;;  %v3177_v57 = vrot.slane %v932_v27, %v3158_v17 }
 0x27f   : > { %v923_v54 = vrot.slane %v915_v33, %v3158_v17  ;;  %v807_v43 = vadd.f32 %v2213_v25, %v3113_v56  ;;  %v1067_v46 = vcombine.low %v3135_v2, %v906_v20  ;;  %v1068_v24 = vcombine.high %v3135_v2, %v906_v20 }
 0x280   : > { %v963_v45 = vcombine.low %v3125_v58, %v913_v38  ;;  %v964_v48 = vcombine.high %v3125_v58, %v913_v38  ;;  %1316 = vrot.lane.b32.xlu1 %v913_v38, %s2660_s20  ;;  %v798_v49 = vpop.f32.mrf.mxu1  ;;  %v904_v50 = vmul.f32 %v843_v61, %v767_v39  ;;  %v911_v51 = vmul.f32 %v3108_v42, %v796_v40 }
 0x281   : > { %v914_v52 = vmul.f32 %v898_v41, %v807_v43  ;;  %v799_v28 = vadd.f32 %v3113_v56, %v798_v49  ;;  %v3189_v29 = vrot.slane %v916_v34, %v3158_v17  ;;  %v1075_v53 = vrot.slane %v1067_v46, %v3158_v17 }
 0x282   : > { %v3193_v0 = vrot.slane %v1068_v24, %v3158_v17  ;;  %v971_v58 = vrot.slane %v963_v45, %v3158_v17  ;;  %v1051_v59 = vcombine.low %v3140_v6, %v904_v50  ;;  %v1052_v60 = vcombine.high %v3140_v6, %v904_v50  ;;  %1312 = vrot.lane.b32.xlu0 %v911_v51, %s2660_s20 }
 0x283   : > { %v947_v42 = vcombine.low %v3131_v63, %v911_v51  ;;  %v948_v61 = vcombine.high %v3131_v63, %v911_v51  ;;  %v3202_v56 = vrot.slane %v964_v48, %v3158_v17  ;;  %v1099_v62 = vcombine.low %v3145_v11, %v914_v52 }
 0x284   : > { %v1100_v1 = vcombine.high %v3145_v11, %v914_v52  ;;  %v912_v2 = vmul.f32 %v887_v55, %v799_v28  ;;  %1302 = vrot.lane.b32.xlu1 %v906_v20, %s2660_s20  ;;  %v1059_v3 = vrot.slane %v1051_v59, %v3158_v17  ;;  %v3209_v4 = vrot.slane %v1052_v60, %v3158_v17 }
 0x285   : > { %v955_v10 = vrot.slane %v947_v42, %v3158_v17  ;;  %v980_v63 = vcombine.high %v923_v54, %v939_v36  ;;  %v962_v5 = vrot.slane %v948_v61, %v3158_v17  ;;  %v1107_v6 = vrot.slane %v1099_v62, %v3158_v17 }
 0x286   : > { %v1083_v7 = vcombine.low %v3149_v14, %v912_v2  ;;  %v1084_v8 = vcombine.high %v3149_v14, %v912_v2  ;;  %v1114_v9 = vrot.slane %v1100_v1, %v3158_v17  ;;  %1298 = vrot.lane.b32.xlu0 %v904_v50, %s2660_s20  ;;  %v1116_v11 = vcombine.high %v1059_v3, %v1075_v53 }
 0x287   : > { %v1012_v12 = vcombine.high %v955_v10, %v971_v58  ;;  %v979_v13 = vcombine.low %v923_v54, %v939_v36  ;;  %v1011_v18 = vcombine.low %v955_v10, %v971_v58  ;;  %v1115_v44 = vcombine.low %v1059_v3, %v1075_v53 }
 0x288   : > { %v1091_v23 = vrot.slane %v1083_v7, %v3158_v17  ;;  %v1098_v15 = vrot.slane %v1084_v8, %v3158_v17  ;;  %1318 = vrot.lane.b32.xlu1 %v914_v52, %s2660_s20  ;;  %v994_v19 = vrot.slane %v980_v63, %v3167_v47  ;;  %v1130_v14 = vrot.slane %v1116_v11, %v3167_v47 }
 0x289   : > { %v1026_v22 = vrot.slane %v1012_v12, %v3167_v47  ;;  %v995_v16 = vcombine.low %v3189_v29, %v3177_v57  ;;  %v3228_v31 = vrot.slane %v979_v13, %v3167_v47  ;;  %v3231_v32 = vrot.slane %v1011_v18, %v3167_v47 }
 0x28a   : > { %v1147_v35 = vcombine.low %v1091_v23, %v1107_v6  ;;  %v1148_v26 = vcombine.high %v1091_v23, %v1107_v6  ;;  %v1163_v27 = vcombine.low %v1098_v15, %v1114_v9  ;;  %v1164_v37 = vcombine.high %v1098_v15, %v1114_v9  ;;  %1314 = vrot.lane.b32.xlu0 %v912_v2, %s2660_s20 }
 0x28b   : > { %v1045_v30 = vcombine.low %v994_v19, %v1026_v22  ;;  %v3234_v21 = vrot.slane %v1115_v44, %v3167_v47  ;;  %v1027_v20 = vcombine.low %v962_v5, %v3202_v56  ;;  %v1131_v38 = vcombine.low %v3209_v4, %v3193_v0 }
 0x28c   : > { %v1162_v33 = vrot.slane %v1148_v26, %v3167_v47  ;;  %v3238_v34 = vrot.slane %v1147_v35, %v3167_v47  ;;  %v1043_v39 = vcombine.low %v3228_v31, %v3231_v32  ;;  %v1044_v40 = vcombine.high %v3228_v31, %v3231_v32 }
 0x28d   : > { %v1003_v25 = vrot.slane %v995_v16, %v3167_v47  ;;  %v1171_v41 = vrot.slane %v1163_v27, %v3167_v47  ;;  %v1035_v46 = vrot.slane %v1027_v20, %v3167_v47  ;;  %v1139_v24 = vrot.slane %v1131_v38, %v3167_v47 }
 0x28e   : > { %v1181_v36 = vcombine.low %v1130_v14, %v1162_v33  ;;  %v1180_v54 = vcombine.high %v3234_v21, %v3238_v34  ;;  %v1179_v43 = vcombine.low %v3234_v21, %v3238_v34  ;;  %v1046_v45 = vcombine.high %v994_v19, %v1026_v22 }
 0x28f   : > { %v1182_v48 = vcombine.high %v1130_v14, %v1162_v33  ;;  %v996_v49 = vcombine.high %v3189_v29, %v3177_v57  ;;  %v1048_v52 = vcombine.high %v1003_v25, %v1035_v46  ;;  %v1047_v28 = vcombine.low %v1003_v25, %v1035_v46 }
 0x290   : > { %v2336_v50 = vpack.i.bf16 %v1181_v36, %v1045_v30  ;;  %v2331_v51 = vpack.i.bf16 %v1180_v54, %v1044_v40  ;;  %v1183_v55 = vcombine.low %v1139_v24, %v1171_v41  ;;  %v1184_v53 = vcombine.high %v1139_v24, %v1171_v41 }
 0x291   : > { %v3257_v58 = vpack.i.bf16 %v1182_v48, %v1046_v45  ;;  %v1028_v59 = vcombine.high %v962_v5, %v3202_v56  ;;  %v1132_v60 = vcombine.high %v3209_v4, %v3193_v0  ;;  %v1178_v57 = vrot.slane %v1164_v37, %v3167_v47 }
 0x292   : > { %2337 = vrot.lane.b32.xlu1 %v2336_v50, %s2663_s4  ;;  %2332 = vrot.lane.b32.xlu0 %v2331_v51, %s2664_s21  ;;  %v2351_v29 = vpack.i.bf16 %v1184_v53, %v1048_v52  ;;  %v2341_v42 = vpack.i.bf16 %v1183_v55, %v1047_v28  ;;  %v1010_v61 = vrot.slane %v996_v49, %v3167_v47 }
 0x293   : > { %v1042_v62 = vrot.slane %v1028_v59, %v3167_v47  ;;  %v1146_v1 = vrot.slane %v1132_v60, %v3167_v47 }
 0x295   : > { %v1049_v2 = vcombine.low %v1010_v61, %v1042_v62  ;;  %v1185_v3 = vcombine.low %v1146_v1, %v1178_v57  ;;  %v1050_v10 = vcombine.high %v1010_v61, %v1042_v62  ;;  %v1186_v56 = vcombine.high %v1146_v1, %v1178_v57 }
 0x296   : > { %2342 = vrot.lane.b32.xlu1 %v2341_v42, %s2665_s7 }
 0x297   : > { %v3269_v63 = vpack.i.bf16 %v1185_v3, %v1049_v2  ;;  %v3271_v0 = vpack.i.bf16 %v1186_v56, %v1050_v10 }
 0x2dd   : > { %v1293_v4 = vpop.permute.xlu1 %1292 }
 0x2de   : > { %1368 = vxpose.xlu1.b32.start [1/2] (short) (narrow) %v1293_v4, 16 }
 0x2df   : > { %v1289_v5 = vpop.permute.xlu0 %1288 }
 0x2e1   : > { %v1309_v6 = vpop.permute.xlu1 %1308 }
 0x2e2   : > { %1496 = vxpose.xlu0.b32.start [1/2] (short) (narrow) %v1309_v6, 16 }
 0x2e3   : > { %v1305_v7 = vpop.permute.xlu0 %1304 }
 0x2e5   : > { %v1295_v8 = vpop.permute.xlu1 %1294 }
 0x2e6   : > { %1369 = vxpose.xlu1.b32.end [2/2] (short) (narrow) %v1295_v8, 16 }
 0x2e7   : > { %v1291_v9 = vpop.permute.xlu0 %1290 }
 0x2e9   : > { %v1311_v12 = vpop.permute.xlu1 %1310 }
 0x2ea   : > { %1497 = vxpose.xlu0.b32.end [2/2] (short) (narrow) %v1311_v12, 16  ;;  %1464 = vxpose.xlu1.b32.start [1/2] (short) (narrow) %v1305_v7, 16 }
 0x2eb   : > { %v1307_v11 = vpop.permute.xlu0 %1306 }
 0x2ed   : > { %v1301_v13 = vpop.permute.xlu1 %1300 }
 0x2ee   : > { %1336 = vxpose.xlu0.b32.start [1/2] (short) (narrow) %v1289_v5, 16  ;;  %1465 = vxpose.xlu1.b32.end [2/2] (short) (narrow) %v1307_v11, 16 }
 0x2ef   : > { %v1297_v23 = vpop.permute.xlu0 %1296 }
 0x2f2   : > { %1337 = vxpose.xlu0.b32.end [2/2] (short) (narrow) %v1291_v9, 16  ;;  %v1317_v15 = vpop.permute.xlu1 %1316 }
 0x2f4   : > { %v1313_v18 = vpop.permute.xlu0 %1312 }
 0x2f5   : > { %1528 = vxpose.xlu1.b32.start [1/2] (short) (narrow) %v1313_v18, 16 }
 0x2f6   : > { %1432 = vxpose.xlu0.b32.start [1/2] (short) (narrow) %v1301_v13, 16  ;;  %v1303_v44 = vpop.permute.xlu1 %1302 }
 0x2f8   : > { %v1299_v19 = vpop.permute.xlu0 %1298 }
 0x2fa   : > { %1433 = vxpose.xlu0.b32.end [2/2] (short) (narrow) %v1303_v44, 16  ;;  %v1319_v14 = vpop.permute.xlu1 %1318 }
 0x2fc   : > { %v1315_v22 = vpop.permute.xlu0 %1314 }
 0x2fd   : > { %1529 = vxpose.xlu1.b32.end [2/2] (short) (narrow) %v1315_v22, 16 }
 0x2fe   : > { %1560 = vxpose.xlu0.b32.start [1/2] (short) (narrow) %v1317_v15, 16 }
 0x302   : > { %1561 = vxpose.xlu0.b32.end [2/2] (short) (narrow) %v1319_v14, 16 }
 0x304   : > { %v2338_v16 = vpop.permute.xlu1 %2337  ;;  %v2333_v35 = vpop.permute.xlu0 %2332 }
 0x305   : > { %v2340_v26 = vunpack.i.h.bf16 %v2338_v16  ;;  %v2339_v27 = vunpack.i.l.bf16 %v2338_v16  ;;  %v2335_v37 = vunpack.i.h.bf16 %v2333_v35  ;;  %v2334_v30 = vunpack.i.l.bf16 %v2333_v35 }
 0x306   : > { %1400 = vxpose.xlu0.b32.start [1/2] (short) (narrow) %v1297_v23, 16 }
 0x307   : > { %v1256_v33 = vsel %vm1243_vm1, %v1179_v43, %v2335_v37  ;;  %v1244_v20 = vsel %vm1243_vm1, %v1043_v39, %v2334_v30 }
 0x308   : > { %v3282_v38 = vsel %vm402_vm0, %v1244_v20, %v2339_v27  ;;  %v3285_v40 = vsel %vm402_vm0, %v1256_v33, %v2340_v26  ;;  %v3290_v21 = vpop.permute.xlu1 %2342 }
 0x30a   : > { %1401 = vxpose.xlu0.b32.end [2/2] (short) (narrow) %v1299_v19, 16 }
 0x31b   : > { %2352 = vrot.lane.b32.xlu1 %v2351_v29, %s2666_s23 }
 0x333   : > { %2347 = vrot.lane.b32.xlu0 %v3257_v58, %s2667_s12 }
 0x35e   : > { %v1384_v34 = vpop.trf.xlu1 }
 0x362   : > { %v1512_v31 = vpop.trf.xlu0  ;;  %v1385_v39 = vpop.trf.xlu1 }
 0x366   : > { %v1513_v32 = vpop.trf.xlu0  ;;  %v1480_v41 = vpop.trf.xlu1 }
 0x36a   : > { %v1352_v25 = vpop.trf.xlu0  ;;  %v1481_v43 = vpop.trf.xlu1 }
 0x36e   : > { %v1353_v36 = vpop.trf.xlu0 }
 0x372   : > { %v1448_v54 = vpop.trf.xlu0 }
 0x373   : > { %v1608_v52 = vcombine.low %v1384_v34, %v1448_v54  ;;  %v1609_v2 = vcombine.high %v1384_v34, %v1448_v54 }
 0x375   : > { %v1544_v24 = vpop.trf.xlu1  ;;  %v1616_v57 = vrot.slane %v1608_v52, %v3158_v17  ;;  %v1623_v30 = vrot.slane %v1609_v2, %v3158_v17 }
 0x376   : > { %v1449_v46 = vpop.trf.xlu0  ;;  %v1624_v48 = vcombine.low %v1480_v41, %v1544_v24  ;;  %v1625_v10 = vcombine.high %v1480_v41, %v1544_v24 }
 0x377   : > { %v1744_v29 = vcombine.low %v1385_v39, %v1449_v46  ;;  %v1745_v3 = vcombine.high %v1385_v39, %v1449_v46 }
 0x378   : > { %v1632_v28 = vrot.slane %v1624_v48, %v3158_v17 }
 0x379   : > { %v1545_v50 = vpop.trf.xlu1  ;;  %v1752_v9 = vrot.slane %v1744_v29, %v3158_v17  ;;  %v1759_v33 = vrot.slane %v1745_v3, %v3158_v17 }
 0x37a   : > { %v1576_v45 = vpop.trf.xlu0  ;;  %v1760_v53 = vcombine.low %v1481_v43, %v1545_v50  ;;  %v1761_v56 = vcombine.high %v1481_v43, %v1545_v50 }
 0x37b   : > { %v1640_v49 = vcombine.low %v1512_v31, %v1576_v45  ;;  %v1641_v12 = vcombine.high %v1512_v31, %v1576_v45  ;;  %v1639_v31 = vrot.slane %v1625_v10, %v3158_v17 }
 0x37c   : > { %v1768_v61 = vrot.slane %v1760_v53, %v3158_v17  ;;  %v1775_v19 = vrot.slane %v1761_v56, %v3158_v17 }
 0x37d   : > { %v1648_v55 = vrot.slane %v1640_v49, %v3158_v17 }
 0x37e   : > { %v1577_v51 = vpop.trf.xlu0 }
 0x37f   : > { %v1776_v58 = vcombine.low %v1513_v32, %v1577_v51  ;;  %v1688_v42 = vcombine.low %v1632_v28, %v1648_v55  ;;  %v1777_v5 = vcombine.high %v1513_v32, %v1577_v51  ;;  %v1689_v23 = vcombine.high %v1632_v28, %v1648_v55 }
 0x380   : > { %v1655_v32 = vrot.slane %v1641_v12, %v3158_v17 }
 0x381   : > { %v1784_v62 = vrot.slane %v1776_v58, %v3158_v17  ;;  %v3300_v15 = vrot.slane %v1688_v42, %v3167_v47  ;;  %v1791_v35 = vrot.slane %v1777_v5, %v3158_v17  ;;  %v1703_v39 = vrot.slane %v1689_v23, %v3167_v47 }
 0x382   : > { %v1416_v59 = vpop.trf.xlu0  ;;  %v1704_v51 = vcombine.low %v1639_v31, %v1655_v32  ;;  %v1705_v3 = vcombine.high %v1639_v31, %v1655_v32 }
 0x383   : > { %v1592_v60 = vcombine.low %v1352_v25, %v1416_v59  ;;  %v1593_v6 = vcombine.high %v1352_v25, %v1416_v59  ;;  %v1824_v18 = vcombine.low %v1768_v61, %v1784_v62  ;;  %v1825_v22 = vcombine.high %v1768_v61, %v1784_v62 }
 0x384   : > { %v1840_v46 = vcombine.low %v1775_v19, %v1791_v35  ;;  %v1841_v62 = vcombine.high %v1775_v19, %v1791_v35 }
 0x385   : > { %v1600_v1 = vrot.slane %v1592_v60, %v3158_v17  ;;  %v1607_v26 = vrot.slane %v1593_v6, %v3158_v17  ;;  %v3319_v25 = vrot.slane %v1824_v18, %v3167_v47  ;;  %v1839_v41 = vrot.slane %v1825_v22, %v3167_v47 }
 0x386   : > { %v1417_v4 = vpop.trf.xlu0  ;;  %v1848_v58 = vrot.slane %v1840_v46, %v3167_v47  ;;  %v1855_v5 = vrot.slane %v1841_v62, %v3167_v47 }
 0x387   : > { %v1656_v7 = vcombine.low %v1600_v1, %v1616_v57  ;;  %v1657_v8 = vcombine.high %v1600_v1, %v1616_v57  ;;  %v1728_v11 = vcombine.low %v1353_v36, %v1417_v4  ;;  %v1729_v13 = vcombine.high %v1353_v36, %v1417_v4 }
 0x388   : > { %v1672_v24 = vcombine.low %v1607_v26, %v1623_v30  ;;  %v1712_v57 = vrot.slane %v1704_v51, %v3167_v47  ;;  %v1673_v1 = vcombine.high %v1607_v26, %v1623_v30  ;;  %v2344_v30 = vunpack.i.l.bf16 %v3290_v21 }
 0x389   : > { %v3303_v44 = vrot.slane %v1656_v7, %v3167_v47  ;;  %v1736_v14 = vrot.slane %v1728_v11, %v3158_v17  ;;  %v1743_v16 = vrot.slane %v1729_v13, %v3158_v17  ;;  %v1671_v27 = vrot.slane %v1657_v8, %v3167_v47 }
 0x38a   : > { %v1680_v59 = vrot.slane %v1672_v24, %v3167_v47  ;;  %v1687_v6 = vrot.slane %v1673_v1, %v3167_v47 }
 0x38b   : > { %v1720_v37 = vcombine.low %v3303_v44, %v3300_v15  ;;  %v1792_v20 = vcombine.low %v1736_v14, %v1752_v9  ;;  %v1793_v34 = vcombine.high %v1736_v14, %v1752_v9  ;;  %v1808_v43 = vcombine.low %v1743_v16, %v1759_v33 }
 0x38c   : > { %v1722_v45 = vcombine.low %v1671_v27, %v1703_v39  ;;  %v1721_v49 = vcombine.high %v3303_v44, %v3300_v15  ;;  %v1723_v60 = vcombine.high %v1671_v27, %v1703_v39  ;;  %v1809_v29 = vcombine.high %v1743_v16, %v1759_v33 }
 0x38d   : > { %v3323_v36 = vrot.slane %v1792_v20, %v3167_v47  ;;  %v1807_v54 = vrot.slane %v1793_v34, %v3167_v47  ;;  %v1816_v52 = vrot.slane %v1808_v43, %v3167_v47  ;;  %v1724_v2 = vcombine.low %v1680_v59, %v1712_v57 }
 0x38e   : > { %v1823_v10 = vrot.slane %v1809_v29, %v3167_v47  ;;  %v1725_v7 = vcombine.high %v1680_v59, %v1712_v57  ;;  %v2345_v27 = vunpack.i.h.bf16 %v3290_v21 }
 0x38f   : > { %v1856_v48 = vcombine.low %v3323_v36, %v3319_v25  ;;  %v1858_v17 = vcombine.low %v1807_v54, %v1839_v41  ;;  %v1857_v50 = vcombine.high %v3323_v36, %v3319_v25  ;;  %v1859_v53 = vcombine.high %v1807_v54, %v1839_v41 }
 0x390   : > { %v1860_v61 = vcombine.low %v1816_v52, %v1848_v58  ;;  %v1861_v4 = vcombine.high %v1816_v52, %v1848_v58  ;;  %v1862_v9 = vcombine.low %v1823_v10, %v1855_v5  ;;  %v1863_v13 = vcombine.high %v1823_v10, %v1855_v5 }
 0x391   : > { %v2361_v28 = vpack.i.bf16 %v1858_v17, %v1722_v45  ;;  %v2356_v55 = vpack.i.bf16 %v1857_v50, %v1721_v49  ;;  %v2371_v42 = vpack.i.bf16 %v1859_v53, %v1723_v60 }
 0x392   : > { %v2376_v56 = vpack.i.bf16 %v1860_v61, %v1724_v2  ;;  %v2381_v8 = vpack.i.bf16 %v1861_v4, %v1725_v7 }
 0x393   : > { %2362 = vrot.lane.b32.xlu0 %v2361_v28, %s2663_s4  ;;  %2357 = vrot.lane.b32.xlu1 %v2356_v55, %s2664_s21  ;;  %s2517_s4 = scalar_lea.vmem %s3382_s9, 128  ;;  %s2669_s21 = smov [#allocation8]  }
 0x394   : > { %p2518_p1 = scmp.ne.s32.totalorder %s3382_s9, %s2517_s4 }
 0x396   : > { %p2519_p4 = pnand %p2518_p1, %p2795_p12 }
 0x397   : > { %2367 = vrot.lane.b32.xlu0 %v3269_v63, %s2668_s10  ;;  %2372 = vrot.lane.b32.xlu1 %v2371_v42, %s2667_s12  ;;  %v1719_v63 = vrot.slane %v1705_v3, %v3167_v47 }
 0x398   : > { %p2520_p8 = pneg %p2519_p4 }
 0x399   : > { %v1726_v12 = vcombine.low %v1687_v6, %v1719_v63  ;;  %v1727_v23 = vcombine.high %v1687_v6, %v1719_v63 }
 0x39b   : > { %2392 = vrot.lane.b32.xlu0 %v3271_v0, %s2660_s20  ;;  %2377 = vrot.lane.b32.xlu1 %v2376_v56, %s2665_s7  ;;  %v2386_v11 = vpack.i.bf16 %v1862_v9, %v1726_v12  ;;  %v2396_v18 = vpack.i.bf16 %v1863_v13, %v1727_v23  ;;  %v2353_v0 = vpop.permute.xlu1 %2352  ;;  %s2521_s7 = sshll.u32 %s2669_s21, 4  ;;  %s2522_s7 = int_to_ptr.vmem [resolvable:$false] %s2521_s7 }
 0x39c   : > { %v2354_v39 = vunpack.i.l.bf16 %v2353_v0  ;;  %p2524_p3 = scmp.lt.s32.totalorder %s3382_s9, %s2522_s7 }
 0x39f   : > { %2382 = vrot.lane.b32.xlu1 %v2381_v8, %s2666_s23  ;;  %s2523_s23 = scalar_lea.vmem %s2522_s7, 256 }
 0x3a0   : > { %p2525_p5 = scmp.lt.s32.totalorder %s2523_s23, %s2517_s4 }
 0x3a2   : > { %p2526_p13 = por %p2525_p5, %p2524_p3 }
 0x3a3   : > { %2387 = vrot.lane.b32.xlu1 %v2386_v11, %s2668_s10 }
 0x3a4   : > { %p2527_p0 = pnand %p2526_p13, %p2520_p8 }
 0x3a5   : > { %v2348_v19 = vpop.permute.xlu0 %2347 }
 0x3a6   : > { %v2350_v22 = vunpack.i.h.bf16 %v2348_v19  ;;  %v2349_v14 = vunpack.i.l.bf16 %v2348_v19 }
 0x3a7   : > { %2397 = vrot.lane.b32.xlu1 %v2396_v18, %s2660_s20  ;;  %s1944_s20 = scalar_lea.sflag [#allocation4], %s2851_s18 }
 0x3a8   : > { %v1247_v35 = vsel %vm1246_vm2, %v3282_v38, %v2349_v14  ;;  %v1258_v26 = vsel %vm1246_vm2, %v3285_v40, %v2350_v22  ;;  %v2355_v40 = vunpack.i.h.bf16 %v2353_v0 }
 0x3a9   : > { %v1249_v34 = vsel %vm1248_vm3, %v1247_v35, %v2344_v30  ;;  %v1259_v31 = vsel %vm1248_vm3, %v1258_v26, %v2345_v27 }
 0x3aa   : > { %v1251_v54 = vsel %vm1250_vm4, %v1249_v34, %v2354_v39  ;;  %v1260_v43 = vsel %vm1250_vm4, %v1259_v31, %v2355_v40 }
 0x405   : > { %v2358_v47 = vpop.permute.xlu1 %2357  ;;  %v3349_v16 = vpop.permute.xlu0 %2362 }
 0x406   : > { %v2360_v49 = vunpack.i.h.bf16 %v2358_v47  ;;  %v2359_v50 = vunpack.i.l.bf16 %v2358_v47  ;;  %v2365_v53 = vunpack.i.h.bf16 %v3349_v16  ;;  %v2364_v58 = vunpack.i.l.bf16 %v3349_v16 }
 0x408   : > { %v1920_v59 = vsel %vm1243_vm1, %v1720_v37, %v2359_v50  ;;  %v1927_v60 = vsel %vm1243_vm1, %v1856_v48, %v2360_v49 }
 0x409   : > { %v3359_v33 = vpop.permute.xlu1 %2372  ;;  %v2368_v20 = vpop.permute.xlu0 %2367 }
 0x40a   : > { %v2370_v32 = vunpack.i.h.bf16 %v2368_v20  ;;  %v2369_v38 = vunpack.i.l.bf16 %v2368_v20  ;;  %v2375_v57 = vunpack.i.h.bf16 %v3359_v33  ;;  %v2374_v29 = vunpack.i.l.bf16 %v3359_v33 }
 0x40c   : > { %v1253_v45 = vsel %vm1252_vm5, %v1251_v54, %v2369_v38  ;;  %v1261_v17 = vsel %vm1252_vm5, %v1260_v43, %v2370_v32 }
 0x40d   : > { %v3365_v41 = vpop.permute.xlu1 %2377  ;;  %v2393_v21 = vpop.permute.xlu0 %2392 }
 0x40e   : > { %v2395_v46 = vunpack.i.h.bf16 %v2393_v21  ;;  %v2394_v24 = vunpack.i.l.bf16 %v2393_v21 }
 0x410   : > { %v1255_v51 = vsel %vm1254_vm6, %v1253_v45, %v2394_v24  ;;  %v1262_v52 = vsel %vm1254_vm6, %v1261_v17, %v2395_v46 }
 0x411   : > { %v2182_v28 = vpack.c.bf16 %v1262_v52, %v1255_v51  ;;  %v2383_v55 = vpop.permute.xlu1 %2382 }
 0x413   : > { %1271 = vst [vmem:[%s376_s22] sm:$0xff] %v2182_v28 }
 0x414   : > { %2530 = shalt.err (!%p2527_p0)
}
 0x415   : > { %s2531_s12 = scalar_lea.hbm %s3380_s19, 128  ;;  %s2535_s27 = scalar_lea.hbm %s3518_s17, 512 }
 0x416   : > { %p2532_p2 = scmp.ne.s32.totalorder %s3380_s19, %s2531_s12  ;;  %p2536_p9 = scmp.lt.s32.totalorder %s3380_s19, %s3518_s17 }
 0x417   : > { %p2537_p11 = scmp.lt.s32.totalorder %s2535_s27, %s2531_s12 }
 0x418   : > { %p2533_p6 = pnand %p2532_p2, %p2795_p12 }
 0x419   : > { %p2538_p10 = por %p2537_p11, %p2536_p9 }
 0x41a   : > { %p2534_p7 = pneg %p2533_p6 }
 0x41c   : > { %p2539_p1 = pnand %p2538_p10, %p2534_p7 }
 0x41e   : > { %2542 = shalt.err (!%p2539_p1)
}
 0x41f   : > { %2226 = dma.vmem_to_hbm [thread:$0]  (%p2795_p12), %s3382_s9, 128, %s3380_s19, %s1944_s20   ;;  %v2380_v15 = vunpack.i.h.bf16 %v3365_v41  ;;  %v2379_v44 = vunpack.i.l.bf16 %v3365_v41  ;;  %v2388_v37 = vpop.permute.xlu1 %2387  ;;  %v2385_v25 = vunpack.i.h.bf16 %v2383_v55  ;;  %v2384_v36 = vunpack.i.l.bf16 %v2383_v55 }
 0x420   : > { %v1928_v48 = vsel %vm402_vm0, %v1927_v60, %v2365_v53  ;;  %v1921_v42 = vsel %vm402_vm0, %v1920_v59, %v2364_v58  ;;  %v2390_v61 = vunpack.i.h.bf16 %v2388_v37  ;;  %v2389_v62 = vunpack.i.l.bf16 %v2388_v37  ;;  %s383_s22 = scalar_lea.vmem [#allocation9], %s2863_s24  ;;  %s3519_s19 = sld [smem:[#allocation27_spill]] }
 0x421   : > { %v1922_v1 = vsel %vm1246_vm2, %v1921_v42, %v2374_v29  ;;  %v1929_v2 = vsel %vm1246_vm2, %v1928_v48, %v2375_v57  ;;  %s1981_s9 = sshll.u32 %s383_s22, 4  ;;  %s1949_s4 = scalar_lea.sflag [#allocation10], %s2851_s18  ;;  %s1982_s9 = int_to_ptr.vmem [resolvable:$true] %s1981_s9 }
 0x422   : > { %v1923_v3 = vsel %vm1248_vm3, %v1922_v1, %v2379_v44  ;;  %v1930_v10 = vsel %vm1248_vm3, %v1929_v2, %v2380_v15  ;;  %s2543_s21 = scalar_lea.vmem %s1982_s9, 128  ;;  %s2670_s24 = smov [#allocation9]  }
 0x423   : > { %v2398_v56 = vpop.permute.xlu1 %2397  ;;  %v1924_v4 = vsel %vm1250_vm4, %v1923_v3, %v2384_v36  ;;  %v1931_v5 = vsel %vm1250_vm4, %v1930_v10, %v2385_v25  ;;  %p2544_p4 = scmp.ne.s32.totalorder %s1982_s9, %s2543_s21  ;;  %s2547_s7 = sshll.u32 %s2670_s24, 4  ;;  %s2548_s7 = int_to_ptr.vmem [resolvable:$false] %s2547_s7 }
 0x424   : > { %v2400_v6 = vunpack.i.h.bf16 %v2398_v56  ;;  %v2399_v7 = vunpack.i.l.bf16 %v2398_v56  ;;  %v1925_v63 = vsel %vm1252_vm5, %v1924_v4, %v2389_v62  ;;  %v1932_v8 = vsel %vm1252_vm5, %v1931_v5, %v2390_v61  ;;  %s2549_s23 = scalar_lea.vmem %s2548_s7, 256  ;;  %p2550_p5 = scmp.lt.s32.totalorder %s1982_s9, %s2548_s7 }
 0x425   : > { %p2545_p8 = pnand %p2544_p4, %p2795_p12  ;;  %p2551_p13 = scmp.lt.s32.totalorder %s2549_s23, %s2543_s21 }
 0x426   : > { %v1926_v9 = vsel %vm1254_vm6, %v1925_v63, %v2399_v7  ;;  %v1933_v12 = vsel %vm1254_vm6, %v1932_v8, %v2400_v6  ;;  %s1979_s20 = scalar_lea.hbm %s3519_s19, %s2175_s13 }
 0x427   : > { %v2183_v11 = vpack.c.bf16 %v1933_v12, %v1926_v9  ;;  %p2546_p3 = pneg %p2545_p8  ;;  %p2552_p0 = por %p2551_p13, %p2550_p5 }
 0x429   : > { %1942 = vst [vmem:[%s383_s22] sm:$0xff] %v2183_v11  ;;  %p2553_p2 = pnand %p2552_p0, %p2546_p3 }
 0x42b   : > { %2556 = shalt.err (!%p2553_p2)
}
 0x42c   : > { %s2557_s0 = scalar_lea.hbm %s1979_s20, 128  ;;  %s2561_s12 = scalar_lea.hbm %s3519_s19, 512 }
 0x42d   : > { %p2558_p6 = scmp.ne.s32.totalorder %s1979_s20, %s2557_s0  ;;  %p2562_p11 = scmp.lt.s32.totalorder %s1979_s20, %s3519_s19 }
 0x42e   : > { %p2563_p10 = scmp.lt.s32.totalorder %s2561_s12, %s2557_s0 }
 0x42f   : > { %p2559_p7 = pnand %p2558_p6, %p2795_p12 }
 0x430   : > { %p2564_p1 = por %p2563_p10, %p2562_p11 }
 0x431   : > { %p2560_p9 = pneg %p2559_p7 }
 0x433   : > { %p2565_p4 = pnand %p2564_p1, %p2560_p9 }
 0x435   : > { %2568 = shalt.err (!%p2565_p4)
}
 0x436   : > { %2227 = dma.vmem_to_hbm [thread:$0]  (%p2795_p12), %s1982_s9, 128, %s1979_s20, %s1949_s4  }
 0x437 PF: > { %s3520_s27 = sld [smem:[#allocation16_spill]]  ;;  %p2251_p8 = scmp.ge.s32.totalorder %s2651_s8, 2 }
 0x438   : > { %s3521_s6 = sld [smem:[#allocation19_spill]] }
 0x43d   : > { %s1993_s28 = sand.u32 1, %s3520_s27  }
 0x43e   : > { %p3522_p3 = scmp.ne.s32.totalorder %s3521_s6, 0  ;;  %s1994_s22 = scalar_lea.sflag [#allocation4], %s1993_s28 }
 0x440   : > { %p2242_p5 = pnand %p2251_p8, %p3522_p3 }
 0x442   : > { %p2243_p13 = pneg %p2242_p5 }
 0x444   : > { %2614 = dma.done.wait (%p2243_p13), %s1994_s22, 128  }
 0x445   : > { %2616 = vsyncadd (%p2243_p13), %s1994_s22, 4294967168  ;;  %s2003_s14 = scalar_lea.sflag [#allocation10], %s1993_s28 }
 0x446   : > { %2618 = dma.done.wait (%p2243_p13), %s2003_s14, 128  }
 0x447   : > { %2620 = vsyncadd (%p2243_p13), %s2003_s14, 4294967168  ;;  %s30_s8 = sadd.s32 1, %s2651_s8   ;;  %s3523_s11 = sld [smem:[#allocation23_spill]] }
 0x448   : > { %p27_p0 = scmp.ge.s32.totalorder %s30_s8, 6   ;;  %s3524_s9 = sld [smem:[#allocation20_spill]] }
 0x449   : > { %s3525_s15 = sld [smem:[#allocation22_spill]]  ;;  %s3526_s24 = smov %s2627_s25 }
 0x44a   : > { %s3527_s25 = smov %s2631_s26  ;;  %s3529_s27 = smov %s2643_s29 }
 0x44b   : > { %s3530_s28 = smov %s2647_s30  ;;  %29 = sbr.rel (!%p27_p0) target bundleno = 16 (0x10), region = 123 }
 0x44d   : > { %s3528_s26 = smov %s3523_s11 }
 0x44e   : > { %s3531_s29 = smov %s3524_s9 }
 0x44f   : > { %s3532_s30 = smov %s3525_s15 }
 0x450   :  { %2008 = vsyncpa [#allocation3], 1 }
 0x451   :  { %2010 = vsyncpa [#allocation3 + $0x1], 1 }
 0x452   :  { %2011 = vsyncpa [#allocation6], 1 }
 0x453   :  { %2013 = vsyncpa [#allocation6 + $0x1], 1 }
 0x454   :  { %2014 = vsyncpa [#allocation4], 1 }
 0x455   :  { %2016 = vsyncpa [#allocation4 + $0x1], 1 }
 0x456   :  { %2017 = vsyncpa [#allocation10], 1 }
 0x457   :  { %2019 = vsyncpa [#allocation10 + $0x1], 1 }

</bundles_post_ra>
